<compile_context>
chip_gen: v7x
topology: tpu7x:2x2x1
jax: 0.10.0
libtpu: 0.0.40
codegen_flags: <defaults>
</compile_context>

<pallas_src>
import math

import jax
import jax.numpy as jnp
from jax.experimental import pallas as pl
from jax.experimental.pallas import tpu as pltpu

STATE_DIM = 256 * 3            # 768
LAYER_DIMS = [STATE_DIM, 256, 128, 64, 32, 1]
MAX_BATCH_TILE = 1024          # sweep 512/1024/2048 on real workloads
_TILE_ALIGN = 16               # sublane-safe for both f32 and bf16 input blocks


def _round_up(n, m):
    return ((n + m - 1) // m) * m


def _choose_batch_tile(batch):
    """Largest tile <= MAX_BATCH_TILE that still yields >= 2 grid steps.

    >= 2 steps lets dimension_semantics=("parallel",) shard the batch across
    both v7x TensorCores; v5e/v6e are single-TC so only the cap matters there.
    """
    half = pl.cdiv(batch, 2)
    tile = min(MAX_BATCH_TILE, _round_up(half, _TILE_ALIGN))
    return max(tile, _TILE_ALIGN)


def _mlp_kernel(x_ref,
                w1_ref, b1_ref,
                w2_ref, b2_ref,
                w3_ref, b3_ref,
                w4_ref, b4_ref,
                w5_ref, b5_ref,
                o_ref):
    """Fused 5-layer MLP for one batch tile. All weights resident in VMEM.

    Input is cast to bf16 here (so HBM carries the caller's dtype exactly
    once); matmul operands are bf16, accumulation / bias / ReLU are f32.
    """
    h = x_ref[...].astype(jnp.bfloat16)                   # (TILE, 768)
    for w_ref, b_ref in ((w1_ref, b1_ref), (w2_ref, b2_ref),
                         (w3_ref, b3_ref), (w4_ref, b4_ref)):
        acc = jnp.dot(h, w_ref[...], preferred_element_type=jnp.float32)
        acc = acc + b_ref[...]                            # f32 bias
        h = jnp.maximum(acc, 0.0).astype(jnp.bfloat16)    # ReLU, back to bf16

    out = jnp.dot(h, w5_ref[...], preferred_element_type=jnp.float32)
    o_ref[...] = (out + b5_ref[...]).astype(o_ref.dtype)  # (TILE, 1) f32


def _resident_spec(shape):
    # Whole array resident in VMEM; constant block index -> no per-step re-DMA.
    return pl.BlockSpec(shape, lambda i: (0, 0))


def prepare_params(params):
    """One-time cast outside the hot path: W -> bf16 (in,out), b -> f32 (1,out)."""
    prepared = []
    for w, b in params:
        prepared.append((jnp.asarray(w, jnp.bfloat16),
                         jnp.asarray(b, jnp.float32).reshape(1, -1)))
    return prepared


def segmentation_value_network(x, params):
    """x: (B, 768), float32 or bfloat16 (other dtypes are cast to f32, matching
    PyTorch's input.float()). params: prepared list of (W bf16 (in,out),
    b f32 (1,out)). Returns (B, 1) float32 values.
    """
    x = jnp.asarray(x)
    if x.dtype not in (jnp.float32, jnp.bfloat16):
        x = x.astype(jnp.float32)
    B, D = x.shape
    assert D == STATE_DIM

    tile = _choose_batch_tile(B)
    num_tiles = pl.cdiv(B, tile)   # partial last tile: OOB input rows only feed
                                   # masked output rows (rows are independent).

    in_specs = [pl.BlockSpec((tile, STATE_DIM), lambda i: (i, 0))]
    flat_params = []
    for (w, b) in params:
        in_specs.append(_resident_spec(w.shape))
        in_specs.append(_resident_spec(b.shape))
        flat_params += [w, b]

    out_specs = pl.BlockSpec((tile, 1), lambda i: (i, 0))

    return pl.pallas_call(
        _mlp_kernel,
        out_shape=jax.ShapeDtypeStruct((B, 1), jnp.float32),
        grid_spec=pltpu.PrefetchScalarGridSpec(
            num_scalar_prefetch=0,
            grid=(num_tiles,),
            in_specs=in_specs,
            out_specs=out_specs,
        ),
        compiler_params=pltpu.CompilerParams(
            # Independent batch tiles: shard across both v7x TensorCores.
            dimension_semantics=("parallel",),
            # Explicit budget: safe on v7x (64 MiB physical / 32 MiB scoped
            # default) and raises v5e's 16 MiB default for TILE=1024.
            vmem_limit_bytes=32 * 1024 * 1024,
        ),
    )(x, *flat_params)


def init_params(key):
    """Deterministic f32 init mimicking nn.Linear default (U[-1/sqrt(fan_in), +])."""
    params = []
    for li in range(len(LAYER_DIMS) - 1):
        fan_in, fan_out = LAYER_DIMS[li], LAYER_DIMS[li + 1]
        key, kw, kb = jax.random.split(key, 3)
        bound = 1.0 / math.sqrt(fan_in)
        w = jax.random.uniform(kw, (fan_in, fan_out), jnp.float32, -bound, bound)
        b = jax.random.uniform(kb, (1, fan_out), jnp.float32, -bound, bound)
        params.append((w, b))
    return params


def reference_forward_f32(x, params):
    h = jnp.asarray(x, jnp.float32)
    for i, (w, b) in enumerate(params):
        h = h @ jnp.asarray(w, jnp.float32) + jnp.asarray(b, jnp.float32)
        if i < len(params) - 1:
            h = jnp.maximum(h, 0.0)
    return h


def reference_forward_bf16(x, params):
    """Mirrors the kernel's numerics: bf16 operands, f32 accumulate/bias/ReLU."""
    h = jnp.asarray(x, jnp.float32).astype(jnp.bfloat16)
    for i, (w, b) in enumerate(params):
        acc = jnp.dot(h, jnp.asarray(w, jnp.bfloat16),
                      preferred_element_type=jnp.float32)
        acc = acc + jnp.asarray(b, jnp.float32)
        if i < len(params) - 1:
            h = jnp.maximum(acc, 0.0).astype(jnp.bfloat16)
        else:
            h = acc
    return h


if __name__ == "__main__":
    key = jax.random.PRNGKey(0)
    kp, kx = jax.random.split(key)

    raw_params = init_params(kp)
    params = prepare_params(raw_params)   # one-time cast, outside the hot path

    # B=300 is not a tile multiple: exercises the partial-last-tile (masked
    # store) path; the adaptive tile (160) yields 2 grid steps so both v7x
    # TensorCores get work. Each "state" is 3 concatenated 256-d embeddings.
    B = 300
    x = jax.random.normal(kx, (B, STATE_DIM), jnp.float32)

    value = jax.block_until_ready(segmentation_value_network(x, params))
    assert value.shape == (B, 1)

    # Tight check against a reference matching the kernel's bf16/f32 numerics.
    ref_bf16 = reference_forward_bf16(x, raw_params)
    assert jnp.allclose(value, ref_bf16, atol=1e-3, rtol=1e-3), \
        "mismatch vs bf16-matched JAX reference"

    # Looser sanity check against the pure-f32 semantics of the PyTorch module.
    ref_f32 = reference_forward_f32(x, raw_params)
    assert jnp.allclose(value, ref_f32, atol=5e-2, rtol=5e-2), \
        "mismatch vs f32 JAX reference"

    # Fast path: upstream already supplies bf16 -> no cast copy anywhere in the
    # wrapper, 2 B/element on the dominant HBM stream.
    xb = x.astype(jnp.bfloat16)
    value_b = jax.block_until_ready(segmentation_value_network(xb, params))
    ref_b = reference_forward_bf16(xb, raw_params)
    assert value_b.shape == (B, 1)
    assert jnp.allclose(value_b, ref_b, atol=1e-3, rtol=1e-3), \
        "mismatch vs bf16-input JAX reference"

    print("KERNEL_OK")
</pallas_src>

<mosaic_0001>
module attributes {stable_mosaic.version = 11 : i64} {
  func.func @_mlp_kernel(%arg0: i32, %arg1: memref<160x768xf32, #tpu.memory_space<vmem>>, %arg2: memref<768x256xbf16, #tpu.memory_space<vmem>>, %arg3: memref<1x256xf32, #tpu.memory_space<vmem>>, %arg4: memref<256x128xbf16, #tpu.memory_space<vmem>>, %arg5: memref<1x128xf32, #tpu.memory_space<vmem>>, %arg6: memref<128x64xbf16, #tpu.memory_space<vmem>>, %arg7: memref<1x64xf32, #tpu.memory_space<vmem>>, %arg8: memref<64x32xbf16, #tpu.memory_space<vmem>>, %arg9: memref<1x32xf32, #tpu.memory_space<vmem>>, %arg10: memref<32x1xbf16, #tpu.memory_space<vmem>>, %arg11: memref<1x1xf32, #tpu.memory_space<vmem>>, %arg12: memref<160x1xf32, #tpu.memory_space<vmem>>) attributes {dimension_semantics = [#tpu.dimension_semantics<parallel>], iteration_bounds = array<i64: 2>, scalar_prefetch = 0 : i64, scratch_operands = 0 : i64, tpu.core_type = #tpu.core_type<tc>, window_params = [{transform_indices = @transform_0, window_bounds = array<i64: 160, 768>}, {pipeline_mode = #tpu.pipeline_mode<synchronous>, transform_indices = @transform_1, window_bounds = array<i64: 768, 256>}, {pipeline_mode = #tpu.pipeline_mode<synchronous>, transform_indices = @transform_2, window_bounds = array<i64: 1, 256>}, {pipeline_mode = #tpu.pipeline_mode<synchronous>, transform_indices = @transform_3, window_bounds = array<i64: 256, 128>}, {pipeline_mode = #tpu.pipeline_mode<synchronous>, transform_indices = @transform_4, window_bounds = array<i64: 1, 128>}, {pipeline_mode = #tpu.pipeline_mode<synchronous>, transform_indices = @transform_5, window_bounds = array<i64: 128, 64>}, {pipeline_mode = #tpu.pipeline_mode<synchronous>, transform_indices = @transform_6, window_bounds = array<i64: 1, 64>}, {pipeline_mode = #tpu.pipeline_mode<synchronous>, transform_indices = @transform_7, window_bounds = array<i64: 64, 32>}, {pipeline_mode = #tpu.pipeline_mode<synchronous>, transform_indices = @transform_8, window_bounds = array<i64: 1, 32>}, {pipeline_mode = #tpu.pipeline_mode<synchronous>, transform_indices = @transform_9, window_bounds = array<i64: 32, 1>}, {pipeline_mode = #tpu.pipeline_mode<synchronous>, transform_indices = @transform_10, window_bounds = array<i64: 1, 1>}, {transform_indices = @transform_11, window_bounds = array<i64: 160, 1>}]} {
    %c0 = arith.constant 0 : index
    %c0_0 = arith.constant 0 : index
    %0 = vector.load %arg1[%c0, %c0_0] : memref<160x768xf32, #tpu.memory_space<vmem>>, vector<160x768xf32>
    %1 = arith.truncf %0 : vector<160x768xf32> to vector<160x768xbf16>
    %c0_1 = arith.constant 0 : index
    %c0_2 = arith.constant 0 : index
    %2 = vector.load %arg2[%c0_1, %c0_2] : memref<768x256xbf16, #tpu.memory_space<vmem>>, vector<768x256xbf16>
    %cst = arith.constant dense<0.000000e+00> : vector<160x256xf32>
    %3 = tpu.matmul %1, %2, %cst {dimension_numbers = #tpu.dot_dimension_numbers<[1], [0], [0], [1], [0, 0, 1, 1], [], []>} : vector<160x768xbf16>, vector<768x256xbf16>, vector<160x256xf32> -> vector<160x256xf32>
    %c0_3 = arith.constant 0 : index
    %c0_4 = arith.constant 0 : index
    %4 = vector.load %arg3[%c0_3, %c0_4] : memref<1x256xf32, #tpu.memory_space<vmem>>, vector<1x256xf32>
    %5 = vector.broadcast %4 : vector<1x256xf32> to vector<160x256xf32>
    %6 = arith.addf %3, %5 : vector<160x256xf32>
    %cst_5 = arith.constant 0.000000e+00 : f32
    %7 = vector.broadcast %cst_5 : f32 to vector<160x256xf32>
    %8 = arith.maximumf %6, %7 : vector<160x256xf32>
    %9 = arith.truncf %8 : vector<160x256xf32> to vector<160x256xbf16>
    %c0_6 = arith.constant 0 : index
    %c0_7 = arith.constant 0 : index
    %10 = vector.load %arg4[%c0_6, %c0_7] : memref<256x128xbf16, #tpu.memory_space<vmem>>, vector<256x128xbf16>
    %cst_8 = arith.constant dense<0.000000e+00> : vector<160x128xf32>
    %11 = tpu.matmul %9, %10, %cst_8 {dimension_numbers = #tpu.dot_dimension_numbers<[1], [0], [0], [1], [0, 0, 1, 1], [], []>} : vector<160x256xbf16>, vector<256x128xbf16>, vector<160x128xf32> -> vector<160x128xf32>
    %c0_9 = arith.constant 0 : index
    %c0_10 = arith.constant 0 : index
    %12 = vector.load %arg5[%c0_9, %c0_10] : memref<1x128xf32, #tpu.memory_space<vmem>>, vector<1x128xf32>
    %13 = vector.broadcast %12 : vector<1x128xf32> to vector<160x128xf32>
    %14 = arith.addf %11, %13 : vector<160x128xf32>
    %cst_11 = arith.constant 0.000000e+00 : f32
    %15 = vector.broadcast %cst_11 : f32 to vector<160x128xf32>
    %16 = arith.maximumf %14, %15 : vector<160x128xf32>
    %17 = arith.truncf %16 : vector<160x128xf32> to vector<160x128xbf16>
    %c0_12 = arith.constant 0 : index
    %c0_13 = arith.constant 0 : index
    %18 = vector.load %arg6[%c0_12, %c0_13] : memref<128x64xbf16, #tpu.memory_space<vmem>>, vector<128x64xbf16>
    %cst_14 = arith.constant dense<0.000000e+00> : vector<160x64xf32>
    %19 = tpu.matmul %17, %18, %cst_14 {dimension_numbers = #tpu.dot_dimension_numbers<[1], [0], [0], [1], [0, 0, 1, 1], [], []>} : vector<160x128xbf16>, vector<128x64xbf16>, vector<160x64xf32> -> vector<160x64xf32>
    %c0_15 = arith.constant 0 : index
    %c0_16 = arith.constant 0 : index
    %20 = vector.load %arg7[%c0_15, %c0_16] : memref<1x64xf32, #tpu.memory_space<vmem>>, vector<1x64xf32>
    %21 = vector.broadcast %20 : vector<1x64xf32> to vector<160x64xf32>
    %22 = arith.addf %19, %21 : vector<160x64xf32>
    %cst_17 = arith.constant 0.000000e+00 : f32
    %23 = vector.broadcast %cst_17 : f32 to vector<160x64xf32>
    %24 = arith.maximumf %22, %23 : vector<160x64xf32>
    %25 = arith.truncf %24 : vector<160x64xf32> to vector<160x64xbf16>
    %c0_18 = arith.constant 0 : index
    %c0_19 = arith.constant 0 : index
    %26 = vector.load %arg8[%c0_18, %c0_19] : memref<64x32xbf16, #tpu.memory_space<vmem>>, vector<64x32xbf16>
    %cst_20 = arith.constant dense<0.000000e+00> : vector<160x32xf32>
    %27 = tpu.matmul %25, %26, %cst_20 {dimension_numbers = #tpu.dot_dimension_numbers<[1], [0], [0], [1], [0, 0, 1, 1], [], []>} : vector<160x64xbf16>, vector<64x32xbf16>, vector<160x32xf32> -> vector<160x32xf32>
    %c0_21 = arith.constant 0 : index
    %c0_22 = arith.constant 0 : index
    %28 = vector.load %arg9[%c0_21, %c0_22] : memref<1x32xf32, #tpu.memory_space<vmem>>, vector<1x32xf32>
    %29 = vector.broadcast %28 : vector<1x32xf32> to vector<160x32xf32>
    %30 = arith.addf %27, %29 : vector<160x32xf32>
    %cst_23 = arith.constant 0.000000e+00 : f32
    %31 = vector.broadcast %cst_23 : f32 to vector<160x32xf32>
    %32 = arith.maximumf %30, %31 : vector<160x32xf32>
    %33 = arith.truncf %32 : vector<160x32xf32> to vector<160x32xbf16>
    %c0_24 = arith.constant 0 : index
    %c0_25 = arith.constant 0 : index
    %34 = vector.load %arg10[%c0_24, %c0_25] : memref<32x1xbf16, #tpu.memory_space<vmem>>, vector<32x1xbf16>
    %cst_26 = arith.constant dense<0.000000e+00> : vector<160x1xf32>
    %35 = tpu.matmul %33, %34, %cst_26 {dimension_numbers = #tpu.dot_dimension_numbers<[1], [0], [0], [1], [0, 0, 1, 1], [], []>} : vector<160x32xbf16>, vector<32x1xbf16>, vector<160x1xf32> -> vector<160x1xf32>
    %c0_27 = arith.constant 0 : index
    %c0_28 = arith.constant 0 : index
    %36 = vector.load %arg11[%c0_27, %c0_28] : memref<1x1xf32, #tpu.memory_space<vmem>>, vector<1x1xf32>
    %37 = vector.broadcast %36 : vector<1x1xf32> to vector<160x1xf32>
    %38 = arith.addf %35, %37 : vector<160x1xf32>
    %c0_29 = arith.constant 0 : index
    %c0_30 = arith.constant 0 : index
    %39 = vector.load %arg12[%c0_29, %c0_30] : memref<160x1xf32, #tpu.memory_space<vmem>>, vector<160x1xf32>
    tpu.vector_store %arg12[%c0_29, %c0_30], %38 {strides = array<i32>} : memref<160x1xf32, #tpu.memory_space<vmem>>, vector<160x1xf32>,
    return
  }
  func.func @transform_0(%arg0: i32) -> (i32, i32) {
    %c0_i32 = arith.constant 0 : i32
    %c0_i32_0 = arith.constant 0 : i32
    return %arg0, %c0_i32 : i32, i32
  }
  func.func @transform_1(%arg0: i32) -> (i32, i32) {
    %c0_i32 = arith.constant 0 : i32
    %c0_i32_0 = arith.constant 0 : i32
    %c0_i32_1 = arith.constant 0 : i32
    return %c0_i32, %c0_i32_0 : i32, i32
  }
  func.func @transform_2(%arg0: i32) -> (i32, i32) {
    %c0_i32 = arith.constant 0 : i32
    %c0_i32_0 = arith.constant 0 : i32
    %c0_i32_1 = arith.constant 0 : i32
    return %c0_i32, %c0_i32_0 : i32, i32
  }
  func.func @transform_3(%arg0: i32) -> (i32, i32) {
    %c0_i32 = arith.constant 0 : i32
    %c0_i32_0 = arith.constant 0 : i32
    %c0_i32_1 = arith.constant 0 : i32
    return %c0_i32, %c0_i32_0 : i32, i32
  }
  func.func @transform_4(%arg0: i32) -> (i32, i32) {
    %c0_i32 = arith.constant 0 : i32
    %c0_i32_0 = arith.constant 0 : i32
    %c0_i32_1 = arith.constant 0 : i32
    return %c0_i32, %c0_i32_0 : i32, i32
  }
  func.func @transform_5(%arg0: i32) -> (i32, i32) {
    %c0_i32 = arith.constant 0 : i32
    %c0_i32_0 = arith.constant 0 : i32
    %c0_i32_1 = arith.constant 0 : i32
    return %c0_i32, %c0_i32_0 : i32, i32
  }
  func.func @transform_6(%arg0: i32) -> (i32, i32) {
    %c0_i32 = arith.constant 0 : i32
    %c0_i32_0 = arith.constant 0 : i32
    %c0_i32_1 = arith.constant 0 : i32
    return %c0_i32, %c0_i32_0 : i32, i32
  }
  func.func @transform_7(%arg0: i32) -> (i32, i32) {
    %c0_i32 = arith.constant 0 : i32
    %c0_i32_0 = arith.constant 0 : i32
    %c0_i32_1 = arith.constant 0 : i32
    return %c0_i32, %c0_i32_0 : i32, i32
  }
  func.func @transform_8(%arg0: i32) -> (i32, i32) {
    %c0_i32 = arith.constant 0 : i32
    %c0_i32_0 = arith.constant 0 : i32
    %c0_i32_1 = arith.constant 0 : i32
    return %c0_i32, %c0_i32_0 : i32, i32
  }
  func.func @transform_9(%arg0: i32) -> (i32, i32) {
    %c0_i32 = arith.constant 0 : i32
    %c0_i32_0 = arith.constant 0 : i32
    %c0_i32_1 = arith.constant 0 : i32
    return %c0_i32, %c0_i32_0 : i32, i32
  }
  func.func @transform_10(%arg0: i32) -> (i32, i32) {
    %c0_i32 = arith.constant 0 : i32
    %c0_i32_0 = arith.constant 0 : i32
    %c0_i32_1 = arith.constant 0 : i32
    return %c0_i32, %c0_i32_0 : i32, i32
  }
  func.func @transform_11(%arg0: i32) -> (i32, i32) {
    %c0_i32 = arith.constant 0 : i32
    %c0_i32_0 = arith.constant 0 : i32
    return %arg0, %c0_i32 : i32, i32
  }
}

</mosaic_0001>

<bundles_post_ra>
// kernel: tpu_custom_call.1
= control target key start
LH: loop header
LB: loop body
LE: loop exit
PB: predicated region body
PF: predicated region fallthrough
CT: control target
= control target key end

     0   :  { %s4598_s0 = inlined_call_operand.hbm [shape: f32[300,768], index: 0, kind: input, shape index: {}]   ;;  %s4599_s1 = inlined_call_operand.hbm [shape: bf16[768,256], index: 1, kind: input, shape index: {}]   ;;  %s4600_s2 = inlined_call_operand.vmem [shape: f32[1,256], index: 2, kind: input, shape index: {}]   ;;  %s4601_s3 = inlined_call_operand.vmem [shape: bf16[256,128], index: 3, kind: input, shape index: {}]   ;;  %s4602_s4 = inlined_call_operand.vmem [shape: f32[1,128], index: 4, kind: input, shape index: {}]   ;;  %s4603_s5 = inlined_call_operand.vmem [shape: bf16[128,64], index: 5, kind: input, shape index: {}]   ;;  %s4604_s6 = inlined_call_operand.vmem [shape: f32[1,64], index: 6, kind: input, shape index: {}]   ;;  %s4605_s7 = inlined_call_operand.vmem [shape: bf16[64,32], index: 7, kind: input, shape index: {}]   ;;  %s4606_s8 = inlined_call_operand.vmem [shape: f32[1,32], index: 8, kind: input, shape index: {}]   ;;  %s4607_s9 = inlined_call_operand.vmem [shape: bf16[32,1], index: 9, kind: input, shape index: {}]   ;;  %s4608_s10 = inlined_call_operand.<no memory space> [shape: f32[1,1], index: 10, kind: input, shape index: {}]   ;;  %s4609_s11 = inlined_call_operand.vmem [shape: f32[300,1], index: 11, kind: output, shape index: {}]  }
   0x1   :  { %v16_v0 = vstv %s4608_s10 }
   0x2   :  { %17 = vst [vmem:[#allocation2] sm:$0x1] %v16_v0 }
   0x3   :  { %18 = vsyncpa [#allocation4], 0 }
   0x4   :  { %20 = vsyncpa [#allocation4 + $0x1], 0 }
   0x5   :  { %21 = vsyncpa [#allocation6], 0  ;;  %s3931_s19 = smov 0   ;;  %s3933_s20 = smov 0  }
   0x6   :  { %s3935_s21 = smov 0   ;;  %s3937_s22 = smov 0  }
   0x7 LB: > { %s3950_s10 = sadd.s32 4294967295, %s3828_s22   ;;  %s3953_s23 = sadd.s32 1, %s3828_s22   ;;  %s3828_s22 = sphi %s3937_s22, %s4632_s22   ;;  %s3824_s21 = sphi %s3935_s21, %s4631_s21   ;;  %s3820_s20 = sphi %s3933_s20, %s4630_s20   ;;  %s3816_s19 = sphi %s3931_s19, %s4629_s19  }
   0x8   : > { %s31_s24 = ssub.s32 %s3828_s22, %s3953_s23  ;;  %s34_s25 = sadd.s32 1, %s3824_s21 }
   0x9   : > { %p32_p0 = scmp.eq.s32.totalorder %s31_s24, 0  ;;  %p41_p1 = scmp.ne.s32.totalorder %s3824_s21, %s3820_s20 }
   0xa   : > { %p42_p2 = scmp.eq.s32.totalorder %s3828_s22, 0  ;;  %p47_p3 = scmp.ne.s32.totalorder %s3820_s20, %s3816_s19 }
   0xb   : > { %s3963_s26 = scalar_select %p32_p0, %s3824_s21, %s34_s25  }
   0xc   : > { %p3965_p4 = por %p42_p2, %p41_p1  ;;  %p4610_p5 = scmp.eq.s32.totalorder %s3950_s10, 0 }
   0xd   : > { %4613 = sst [smem:[#allocation10_spill]] %s3963_s26  ;;  %p281_p6 = scmp.eq.s32.totalorder %s3950_s10, 1 }
   0xe   : > { %s4614_s27 = scalar_select %p3965_p4, 1, 0 }
   0xf   : > { %p2873_p7 = scmp.ge.s32.totalorder %s3828_s22, 1  ;;  %p3974_p8 = por %p4610_p5, %p47_p3 }
  0x10   : > { %p294_p9 = scmp.lt.s32.totalorder %s3828_s22, 3  ;;  %p3979_p10 = por %p281_p6, %p41_p1 }
  0x11   : > { %s4615_s28 = scalar_select %p3974_p8, 1, 0 }
  0x12   : > { %s4616_s29 = scalar_select %p3979_p10, 1, 0 }
  0x13   : > { %p3983_p11 = pnand %p2873_p7, %p294_p9  ;;  %s3862_s12 = smov [#allocation5]  }
  0x14   : > { %s306_s13 = sshll.u32 %s3862_s12, 4  ;;  %s3702_s17 = scalar_lea.hbm %s4599_s1, 12288  ;;  %s307_s13 = int_to_ptr.vmem [resolvable:$true] %s306_s13 }
  0x15   : > { %s4617_s30 = scalar_select %p3983_p11, 1, 0 }
  0x16   : > { %p3415_p12 = pneg %p3983_p11  ;;  %p3703_p0 = scmp.ne.s32.totalorder %s4599_s1, %s3702_s17 }
  0x17   : > { %p3709_p6 = scmp.lt.u32.totalorder %s3702_s17, %s4599_s1 }
  0x18   : > { %p3991_p13 = pnand %p3415_p12, %p4610_p5 }
  0x1a   : > { %p3704_p1 = pneg %p3991_p13 }
  0x1c   : > { %p3705_p2 = pnand %p3704_p1, %p3703_p0 }
  0x1e   : > { %p3706_p3 = pneg %p3705_p2 }
  0x20   : > { %p3711_p7 = pnand %p3709_p6, %p3706_p3 }
  0x22   : > { %3714 = shalt.err (!%p3711_p7)
}
  0x23   : > { %s3715_s12 = scalar_lea.vmem %s307_s13, 12288  ;;  %p3723_p10 = scmp.lt.s32.totalorder %s307_s13, %s307_s13 }
  0x24   : > { %p3716_p9 = scmp.ne.s32.totalorder %s307_s13, %s3715_s12  ;;  %p3724_p8 = scmp.lt.s32.totalorder %s3715_s12, %s3715_s12 }
  0x26   : > { %p3718_p12 = pnand %p3716_p9, %p3704_p1  ;;  %p3725_p11 = por %p3724_p8, %p3723_p10 }
  0x28   : > { %p3719_p5 = pneg %p3718_p12 }
  0x2a   : > { %p3726_p4 = pnand %p3725_p11, %p3719_p5 }
  0x2c   : > { %3729 = shalt.err (!%p3726_p4)
}
  0x2d   : > { %s3863_s15 = smov 128   ;;  %s3864_s16 = smov 8  }
  0x2e   : > { %3418 = dma.hbm_to_vmem [thread:$0]  (!%p3991_p13), %s4599_s1, 12288, %s307_s13, [#allocation6], %s3863_s15, %s3863_s15, %s3864_s16  }
  0x2f   : > { %p2875_p0 = scmp.ge.s32.totalorder %s3828_s22, 2 }
  0x30   : > { %p4619_p2 = scmp.ne.s32.totalorder (!%p2875_p0), %s4614_s27, 0 }
  0x31   : > { %343 = sbr.rel (%p2875_p0) target bundleno = 92 (0x5c), region = 56 }
  0x38   : > { %346 = sbr.rel (!%p4619_p2) target bundleno = 92 (0x5c), region = 60  ;;  %s347_s17 = sand.u32 (%p4619_p2), 1, %s3824_s21  }
  0x39   : > { %s352_s24 = smul.u32 (%p4619_p2), 20, %s3828_s22  ;;  %s4019_s18 = scalar_lea.sflag (%p4619_p2), [#allocation4], %s347_s17 }
  0x3a   : > { %s3406_s25 = smul.u32 (%p4619_p2), 960, %s347_s17 }
  0x3b   : > { %s353_s12 = ssub.s32 (%p4619_p2), 38, %s352_s24 }
  0x3c   : > { %p354_p4 = scmp.lt.s32.totalorder (%p4619_p2), %s353_s12, 20  ;;  %s351_s13 = scalar_lea.vmem (%p4619_p2), [#allocation3], %s3406_s25 }
  0x3f   : > { %s4634_s12 = smov (!%p354_p4, %s353_s12), 20 }
  0x40   : > { %s4016_s26 = smul.u32 768, %s4634_s12 }
  0x42   : > { %s359_s14 = ssub.s32 15360, %s4016_s26 }
  0x43   : > { %360 = vsyncadd %s4019_s18, %s359_s14  ;;  %p2878_p5 = scmp.ne.s32.totalorder %s4016_s26, 0  ;;  %s3420_s27 = smul.u32 15360, %s3828_s22 }
  0x44   : > { %s366_s15 = sshll.u32 %s351_s13, 4  ;;  %s3734_s22 = scalar_lea.hbm %s4598_s0, 29184  ;;  %s4029_s15 = int_to_ptr.vmem [resolvable:$true] %s366_s15 }
  0x45   : > { %s4027_s24 = scalar_lea.hbm %s4598_s0, %s3420_s27 }
  0x46   : > { %s3730_s17 = scalar_lea.hbm %s4027_s24, %s4016_s26  ;;  %p3735_p13 = scmp.lt.u32.totalorder %s4027_s24, %s4598_s0 }
  0x47   : > { %p3731_p8 = scmp.ne.s32.totalorder %s4027_s24, %s3730_s17  ;;  %p3736_p1 = scmp.lt.u32.totalorder %s3734_s22, %s3730_s17 }
  0x48   : > { %p3738_p6 = scmp.lt.u32.totalorder %s3730_s17, %s4027_s24 }
  0x49   : > { %p3732_p10 = pnand %p3731_p8, %p2878_p5  ;;  %p3737_p3 = por %p3736_p1, %p3735_p13 }
  0x4b   : > { %p3733_p11 = pneg %p3732_p10  ;;  %p3739_p7 = por %p3738_p6, %p3737_p3 }
  0x4d   : > { %p3740_p9 = pnand %p3739_p7, %p3733_p11 }
  0x4f   : > { %3743 = shalt.err (!%p3740_p9)
}
  0x50   : > { %s3744_s27 = scalar_lea.vmem %s4029_s15, %s4016_s26  ;;  %s3865_s16 = smov [#allocation3]  }
  0x51   : > { %p3745_p12 = scmp.ne.s32.totalorder %s4029_s15, %s3744_s27  ;;  %s3748_s19 = sshll.u32 %s3865_s16, 4  ;;  %s3749_s19 = int_to_ptr.vmem [resolvable:$false] %s3748_s19 }
  0x52   : > { %s3750_s25 = scalar_lea.vmem %s3749_s19, 30720  ;;  %p3751_p4 = scmp.lt.s32.totalorder %s4029_s15, %s3749_s19 }
  0x53   : > { %p3746_p0 = pnand %p3745_p12, %p2878_p5  ;;  %p3752_p8 = scmp.lt.s32.totalorder %s3750_s25, %s3744_s27 }
  0x55   : > { %p3747_p2 = pneg %p3746_p0  ;;  %p3753_p10 = por %p3752_p8, %p3751_p4 }
  0x57   : > { %p3754_p13 = pnand %p3753_p10, %p3747_p2 }
  0x59   : > { %3757 = shalt.err (!%p3754_p13)
}
  0x5a   : > { %s3866_s17 = smov 768   ;;  %s3867_s12 = smov 48  }
  0x5b   : > { %372 = dma.hbm_to_vmem [thread:$0]  (%p2878_p5), %s4027_s24, %s4016_s26, %s4029_s15, %s4019_s18, %s3866_s17, %s3866_s17, %s3867_s12  }
  0x5c PF: > { %p4620_p11 = scmp.ne.s32.totalorder %s4617_s30, 0 }
  0x5d   : > { %s4059_s22 = sand.u32 (!%p4620_p11), 1, %s3820_s20   ;;  %p4621_p1 = scmp.ne.s32.totalorder (!%p4620_p11), %s4615_s28, 0 }
  0x5e   : > { %378 = sbr.rel (%p4620_p11) target bundleno = 1556 (0x614), region = 64  ;;  %s381_s13 = scalar_lea.sflag (!%p4620_p11), [#allocation4], %s4059_s22 }
  0x5f   : > { %s3408_s14 = smul.u32 (!%p4620_p11), 960, %s4059_s22 }
  0x61   : > { %s4063_s27 = scalar_lea.vmem (!%p4620_p11), [#allocation3], %s3408_s14 }
  0x65   : > { %3807 = dma.done.wait (%p4621_p1), %s381_s13, 15360  }
  0x66   : > { %3809 = vsyncadd (%p4621_p1), %s381_s13, 4294951936  ;;  %p4622_p5 = scmp.eq.s32.totalorder %s3950_s10, 0 }
  0x68   : > { %3811 = dma.done.wait (%p4622_p5), [#allocation6], 12288   ;;  %p4623_p3 = pmov %p4622_p5 }
  0x69   : > { %v3524_v1 = vld [vmem:[#allocation5 + $0x4] ss:$8 sps:$4 sm:$0xff]   ;;  %v3526_v2 = vld [vmem:[#allocation5] ss:$8 sps:$4 sm:$0xff]   ;;  %v3527_v3 = vld [vmem:[#allocation5 + $0x14] ss:$8 sps:$4 sm:$0xff]  }
  0x6a   : > { %3813 = vsyncadd (%p4623_p3), [#allocation6], 4294955008  ;;  %1206 = vmatprep.subr.bf16.mxu0 %v3524_v1  ;;  %3254 = vmatprep.subr.bf16.mxu1 %v3524_v1  ;;  %v3529_v4 = vld [vmem:[#allocation5 + $0x10] ss:$8 sps:$4 sm:$0xff]   ;;  %v3530_v5 = vld [vmem:[#allocation5 + $0x24] ss:$8 sps:$4 sm:$0xff]  }
  0x6b   : > { %1207 = vmatpush1.bf16.msra.mxu0 %v3526_v2  ;;  %3270 = vmatpush1.bf16.msra.mxu1 %v3526_v2  ;;  %v3532_v6 = vld [vmem:[#allocation5 + $0x20] ss:$8 sps:$4 sm:$0xff]   ;;  %v3533_v7 = vld [vmem:[#allocation5 + $0x34] ss:$8 sps:$4 sm:$0xff]   ;;  %v3535_v8 = vld [vmem:[#allocation5 + $0x30] ss:$8 sps:$4 sm:$0xff]  }
  0x6c   : > { %1208 = vmatprep.subr.bf16.mxu0 %v3527_v3  ;;  %3255 = vmatprep.subr.bf16.mxu1 %v3527_v3  ;;  %v3536_v9 = vld [vmem:[#allocation5 + $0x44] ss:$8 sps:$4 sm:$0xff]   ;;  %v3538_v10 = vld [vmem:[#allocation5 + $0x40] ss:$8 sps:$4 sm:$0xff]   ;;  %v3539_v11 = vld [vmem:[#allocation5 + $0x54] ss:$8 sps:$4 sm:$0xff]  }
  0x6d   : > { %v3541_v12 = vld [vmem:[#allocation5 + $0x50] ss:$8 sps:$4 sm:$0xff]   ;;  %v3542_v13 = vld [vmem:[#allocation5 + $0x64] ss:$8 sps:$4 sm:$0xff]   ;;  %v3544_v17 = vld [vmem:[#allocation5 + $0x60] ss:$8 sps:$4 sm:$0xff]  }
  0x6e   : > { %v439_v14 = vld [vmem:[%s4063_s27 + $0x8] sm:$0xff]  ;;  %v445_v15 = vld [vmem:[%s4063_s27 + $0x38] sm:$0xff]  ;;  %v438_v36 = vld [vmem:[%s4063_s27] sm:$0xff]  ;;  %vm2196_vm0 = vcmask 523264   ;;  %vm2393_vm1 = vcmask 261120   ;;  %s3409_s26 = smul.u32 160, %s4059_s22 }
  0x6f   : > { %1209 = vmatpush1.bf16.msra.mxu0 %v3529_v4  ;;  %3271 = vmatpush1.bf16.msra.mxu1 %v3529_v4  ;;  %v559_v16 = vpack.c.bf16 %v445_v15, %v439_v14  ;;  %v3545_v18 = vld [vmem:[#allocation5 + $0x74] ss:$8 sps:$4 sm:$0xff]   ;;  %v3547_v19 = vld [vmem:[#allocation5 + $0x70] ss:$8 sps:$4 sm:$0xff]   ;;  %v3548_v20 = vld [vmem:[#allocation5 + $0x84] ss:$8 sps:$4 sm:$0xff]  }
  0x70   : > { %1210 = vmatprep.subr.bf16.mxu0 %v3530_v5  ;;  %3256 = vmatprep.subr.bf16.mxu1 %v3530_v5  ;;  %v3550_v21 = vld [vmem:[#allocation5 + $0x80] ss:$8 sps:$4 sm:$0xff]   ;;  %v3551_v22 = vld [vmem:[#allocation5 + $0x94] ss:$8 sps:$4 sm:$0xff]   ;;  %v3553_v23 = vld [vmem:[#allocation5 + $0x90] ss:$8 sps:$4 sm:$0xff]  }
  0x71   : > { %1238 = vmatprep.mubr.bf16.mxu0 %v559_v16  ;;  %v3554_v24 = vld [vmem:[#allocation5 + $0xa4] ss:$8 sps:$4 sm:$0xff]   ;;  %v3556_v25 = vld [vmem:[#allocation5 + $0xa0] ss:$8 sps:$4 sm:$0xff]   ;;  %v3557_v26 = vld [vmem:[#allocation5 + $0xb4] ss:$8 sps:$4 sm:$0xff]  }
  0x72   : > { %v3559_v27 = vld [vmem:[#allocation5 + $0xb0] ss:$8 sps:$4 sm:$0xff]   ;;  %v3560_v28 = vld [vmem:[#allocation5 + $0xc4] ss:$8 sps:$4 sm:$0xff]   ;;  %v3562_v29 = vld [vmem:[#allocation5 + $0xc0] ss:$8 sps:$4 sm:$0xff]  }
  0x73   : > { %1211 = vmatpush1.bf16.msra.mxu0 %v3532_v6  ;;  %3272 = vmatpush1.bf16.msra.mxu1 %v3532_v6  ;;  %v3563_v30 = vld [vmem:[#allocation5 + $0xd4] ss:$8 sps:$4 sm:$0xff]   ;;  %v3565_v31 = vld [vmem:[#allocation5 + $0xd0] ss:$8 sps:$4 sm:$0xff]   ;;  %v3566_v32 = vld [vmem:[#allocation5 + $0xe4] ss:$8 sps:$4 sm:$0xff]  }
  0x74   : > { %1212 = vmatprep.subr.bf16.mxu0 %v3533_v7  ;;  %3257 = vmatprep.subr.bf16.mxu1 %v3533_v7  ;;  %v3568_v33 = vld [vmem:[#allocation5 + $0xe0] ss:$8 sps:$4 sm:$0xff]   ;;  %v3569_v34 = vld [vmem:[#allocation5 + $0xf4] ss:$8 sps:$4 sm:$0xff]   ;;  %v3571_v35 = vld [vmem:[#allocation5 + $0xf0] ss:$8 sps:$4 sm:$0xff]  }
  0x75   : > { %v444_v37 = vld [vmem:[%s4063_s27 + $0x30] sm:$0xff]  ;;  %v3574_v38 = vld [vmem:[#allocation5 + $0x104] ss:$8 sps:$4 sm:$0xff]   ;;  %v457_v40 = vld [vmem:[%s4063_s27 + $0x98] sm:$0xff]  ;;  %vm2537_vm2 = vcmask 7168   ;;  %s4450_s28 = scalar_lea.vmem [#allocation7], %s3409_s26  }
  0x76   : > { %v451_v39 = vld [vmem:[%s4063_s27 + $0x68] sm:$0xff]  ;;  %v558_v41 = vpack.c.bf16 %v444_v37, %v438_v36  ;;  %v3577_v44 = vld [vmem:[#allocation5 + $0x114] ss:$8 sps:$4 sm:$0xff]   ;;  %v3575_v45 = vld [vmem:[#allocation5 + $0x110] ss:$8 sps:$4 sm:$0xff]   ;;  %p4624_p6 = scmp.ne.s32.totalorder %s4616_s29, 0 }
  0x77   : > { %1213 = vmatpush1.bf16.msra.mxu0 %v3535_v8  ;;  %3273 = vmatpush1.bf16.msra.mxu1 %v3535_v8  ;;  %v3572_v42 = vld [vmem:[#allocation5 + $0x100] ss:$8 sps:$4 sm:$0xff]   ;;  %v565_v43 = vpack.c.bf16 %v457_v40, %v451_v39  ;;  %v456_v47 = vld [vmem:[%s4063_s27 + $0x90] sm:$0xff]  ;;  %v3580_v48 = vld [vmem:[#allocation5 + $0x124] ss:$8 sps:$4 sm:$0xff]   ;;  %s2565_s22 = smul.u32 (%p4624_p6), 20, %s3950_s10 }
  0x78   : > { %1214 = vmatprep.subr.bf16.mxu0 %v3536_v9  ;;  %3258 = vmatprep.subr.bf16.mxu1 %v3536_v9  ;;  %v450_v46 = vld [vmem:[%s4063_s27 + $0x60] sm:$0xff]  ;;  %v463_v49 = vld [vmem:[%s4063_s27 + $0xc8] sm:$0xff]  ;;  %v469_v50 = vld [vmem:[%s4063_s27 + $0xf8] sm:$0xff]  ;;  %s3045_s30 = smul.u32 (%p4624_p6), 160, %s3950_s10 }
  0x79   : > { %v564_v51 = vpack.c.bf16 %v456_v47, %v450_v46  ;;  %v3578_v52 = vld [vmem:[#allocation5 + $0x120] ss:$8 sps:$4 sm:$0xff]   ;;  %v571_v53 = vpack.c.bf16 %v469_v50, %v463_v49  ;;  %v3583_v54 = vld [vmem:[#allocation5 + $0x134] ss:$8 sps:$4 sm:$0xff]   ;;  %v3581_v55 = vld [vmem:[#allocation5 + $0x130] ss:$8 sps:$4 sm:$0xff]  }
  0x7a   : > { %v462_v56 = vld [vmem:[%s4063_s27 + $0xc0] sm:$0xff]  ;;  %v468_v57 = vld [vmem:[%s4063_s27 + $0xf0] sm:$0xff]  ;;  %v475_v59 = vld [vmem:[%s4063_s27 + $0x128] sm:$0xff]  ;;  %s2566_s18 = ssub.s32 (%p4624_p6), 38, %s2565_s22  ;;  %s4499_s24 = scalar_lea.vmem (%p4624_p6), %s4609_s11, %s3045_s30  }
  0x7b   : > { %1215 = vmatpush1.bf16.msra.mxu0 %v3538_v10  ;;  %3274 = vmatpush1.bf16.msra.mxu1 %v3538_v10  ;;  %v3586_v58 = vld [vmem:[#allocation5 + $0x144] ss:$8 sps:$4 sm:$0xff]   ;;  %v481_v60 = vld [vmem:[%s4063_s27 + $0x158] sm:$0xff]  ;;  %v570_v61 = vpack.c.bf16 %v468_v57, %v462_v56  ;;  %v3584_v62 = vld [vmem:[#allocation5 + $0x140] ss:$8 sps:$4 sm:$0xff]   ;;  %p2567_p7 = scmp.lt.s32.totalorder (%p4624_p6), %s2566_s18, 20 }
  0x7c   : > { %1216 = vmatprep.subr.bf16.mxu0 %v3539_v11  ;;  %3259 = vmatprep.subr.bf16.mxu1 %v3539_v11  ;;  %v577_v63 = vpack.c.bf16 %v481_v60, %v475_v59  ;;  %v3589_v0 = vld [vmem:[#allocation5 + $0x154] ss:$8 sps:$4 sm:$0xff]   ;;  %v3587_v1 = vld [vmem:[#allocation5 + $0x150] ss:$8 sps:$4 sm:$0xff]   ;;  %v474_v2 = vld [vmem:[%s4063_s27 + $0x120] sm:$0xff] }
  0x7d   : > { %v480_v3 = vld [vmem:[%s4063_s27 + $0x150] sm:$0xff]  ;;  %v3592_v4 = vld [vmem:[#allocation5 + $0x164] ss:$8 sps:$4 sm:$0xff]   ;;  %v493_v6 = vld [vmem:[%s4063_s27 + $0x1b8] sm:$0xff] }
  0x7e   : > { %v487_v5 = vld [vmem:[%s4063_s27 + $0x188] sm:$0xff]  ;;  %v576_v7 = vpack.c.bf16 %v480_v3, %v474_v2  ;;  %v3595_v10 = vld [vmem:[#allocation5 + $0x174] ss:$8 sps:$4 sm:$0xff]   ;;  %v3593_v11 = vld [vmem:[#allocation5 + $0x170] ss:$8 sps:$4 sm:$0xff]  }
  0x7f   : > { %1217 = vmatpush1.bf16.msra.mxu0 %v3541_v12  ;;  %3275 = vmatpush1.bf16.msra.mxu1 %v3541_v12  ;;  %v3590_v8 = vld [vmem:[#allocation5 + $0x160] ss:$8 sps:$4 sm:$0xff]   ;;  %v583_v9 = vpack.c.bf16 %v493_v6, %v487_v5  ;;  %v3598_v14 = vld [vmem:[#allocation5 + $0x184] ss:$8 sps:$4 sm:$0xff]   ;;  %v505_v16 = vld [vmem:[%s4063_s27 + $0x218] sm:$0xff] }
  0x80   : > { %1218 = vmatprep.subr.bf16.mxu0 %v3542_v13  ;;  %3260 = vmatprep.subr.bf16.mxu1 %v3542_v13  ;;  %v486_v12 = vld [vmem:[%s4063_s27 + $0x180] sm:$0xff]  ;;  %v492_v13 = vld [vmem:[%s4063_s27 + $0x1b0] sm:$0xff]  ;;  %v499_v15 = vld [vmem:[%s4063_s27 + $0x1e8] sm:$0xff] }
  0x81   : > { %v529_v36 = vld [vmem:[%s4063_s27 + $0x2d8] sm:$0xff]  ;;  %v3608_v37 = vld [vmem:[#allocation5 + $0x1c0] ss:$8 sps:$4 sm:$0xff]  }
  0x82   : > { %v3613_v39 = vld [vmem:[#allocation5 + $0x1d4] ss:$8 sps:$4 sm:$0xff]   ;;  %v447_v46 = vld [vmem:[%s4063_s27 + $0x48] sm:$0xff] }
  0x83   : > { %1219 = vmatpush1.bf16.msra.mxu0 %v3544_v17  ;;  %3276 = vmatpush1.bf16.msra.mxu1 %v3544_v17  ;;  %v3596_v17 = vld [vmem:[#allocation5 + $0x180] ss:$8 sps:$4 sm:$0xff]   ;;  %v3619_v50 = vld [vmem:[#allocation5 + $0x1f4] ss:$8 sps:$4 sm:$0xff]  }
  0x84   : > { %1220 = vmatprep.subr.bf16.mxu0 %v3545_v18  ;;  %3261 = vmatprep.subr.bf16.mxu1 %v3545_v18  ;;  %v582_v18 = vpack.c.bf16 %v492_v13, %v486_v12  ;;  %v459_v56 = vld [vmem:[%s4063_s27 + $0xa8] sm:$0xff]  ;;  %v3625_v60 = vld [vmem:[#allocation5 + $0x214] ss:$8 sps:$4 sm:$0xff]   ;;  %v3629_v12 = vld [vmem:[#allocation5 + $0x230] ss:$8 sps:$4 sm:$0xff]  }
  0x85   : > { %v471_v2 = vld [vmem:[%s4063_s27 + $0x108] sm:$0xff]  ;;  %v3631_v6 = vld [vmem:[#allocation5 + $0x234] ss:$8 sps:$4 sm:$0xff]  }
  0x86   : > { %v464_v13 = vld [vmem:[%s4063_s27 + $0xd0] sm:$0xff] }
  0x87   : > { %1221 = vmatpush1.bf16.msra.mxu0 %v3547_v19  ;;  %3277 = vmatpush1.bf16.msra.mxu1 %v3547_v19  ;;  %v3601_v19 = vld [vmem:[#allocation5 + $0x194] ss:$8 sps:$4 sm:$0xff]  }
  0x88   : > { %1222 = vmatprep.subr.bf16.mxu0 %v3548_v20  ;;  %3262 = vmatprep.subr.bf16.mxu1 %v3548_v20  ;;  %v589_v20 = vpack.c.bf16 %v505_v16, %v499_v15  ;;  %v3634_v16 = vld [vmem:[#allocation5 + $0x244] ss:$8 sps:$4 sm:$0xff]  }
  0x8b   : > { %1223 = vmatpush1.bf16.msra.mxu0 %v3550_v21  ;;  %3278 = vmatpush1.bf16.msra.mxu1 %v3550_v21  ;;  %v3599_v21 = vld [vmem:[#allocation5 + $0x190] ss:$8 sps:$4 sm:$0xff]  }
  0x8c   : > { %1224 = vmatprep.subr.bf16.mxu0 %v3551_v22  ;;  %3263 = vmatprep.subr.bf16.mxu1 %v3551_v22  ;;  %v498_v22 = vld [vmem:[%s4063_s27 + $0x1e0] sm:$0xff] }
  0x8f   : > { %1225 = vmatpush1.bf16.msra.mxu0 %v3553_v23  ;;  %3279 = vmatpush1.bf16.msra.mxu1 %v3553_v23  ;;  %v504_v23 = vld [vmem:[%s4063_s27 + $0x210] sm:$0xff] }
  0x90   : > { %1226 = vmatprep.subr.bf16.mxu0 %v3554_v24  ;;  %3264 = vmatprep.subr.bf16.mxu1 %v3554_v24  ;;  %v3604_v24 = vld [vmem:[#allocation5 + $0x1a4] ss:$8 sps:$4 sm:$0xff]  }
  0x93   : > { %1227 = vmatpush1.bf16.msra.mxu0 %v3556_v25  ;;  %3280 = vmatpush1.bf16.msra.mxu1 %v3556_v25  ;;  %v511_v25 = vld [vmem:[%s4063_s27 + $0x248] sm:$0xff] }
  0x94   : > { %1228 = vmatprep.subr.bf16.mxu0 %v3557_v26  ;;  %3265 = vmatprep.subr.bf16.mxu1 %v3557_v26  ;;  %v517_v26 = vld [vmem:[%s4063_s27 + $0x278] sm:$0xff] }
  0x97   : > { %1229 = vmatpush1.bf16.msra.mxu0 %v3559_v27  ;;  %3281 = vmatpush1.bf16.msra.mxu1 %v3559_v27  ;;  %v3602_v27 = vld [vmem:[#allocation5 + $0x1a0] ss:$8 sps:$4 sm:$0xff]  }
  0x98   : > { %1230 = vmatprep.subr.bf16.mxu0 %v3560_v28  ;;  %3266 = vmatprep.subr.bf16.mxu1 %v3560_v28  ;;  %v588_v28 = vpack.c.bf16 %v504_v23, %v498_v22  ;;  %v3637_v22 = vld [vmem:[#allocation5 + $0x254] ss:$8 sps:$4 sm:$0xff]   ;;  %v547_v23 = vld [vmem:[%s4063_s27 + $0x368] sm:$0xff] }
  0x9b   : > { %1231 = vmatpush1.bf16.msra.mxu0 %v3562_v29  ;;  %3282 = vmatpush1.bf16.msra.mxu1 %v3562_v29  ;;  %v3607_v29 = vld [vmem:[#allocation5 + $0x1b4] ss:$8 sps:$4 sm:$0xff]  }
  0x9c   : > { %1232 = vmatprep.subr.bf16.mxu0 %v3563_v30  ;;  %3267 = vmatprep.subr.bf16.mxu1 %v3563_v30  ;;  %v595_v30 = vpack.c.bf16 %v517_v26, %v511_v25  ;;  %v546_v26 = vld [vmem:[%s4063_s27 + $0x360] sm:$0xff] }
  0x9f   : > { %1233 = vmatpush1.bf16.msra.mxu0 %v3565_v31  ;;  %3283 = vmatpush1.bf16.msra.mxu1 %v3565_v31  ;;  %v3605_v31 = vld [vmem:[#allocation5 + $0x1b0] ss:$8 sps:$4 sm:$0xff]  }
  0xa0   : > { %1234 = vmatprep.subr.bf16.mxu0 %v3566_v32  ;;  %3268 = vmatprep.subr.bf16.mxu1 %v3566_v32  ;;  %v510_v32 = vld [vmem:[%s4063_s27 + $0x240] sm:$0xff] }
  0xa3   : > { %1235 = vmatpush1.bf16.msra.mxu0 %v3568_v33  ;;  %3284 = vmatpush1.bf16.msra.mxu1 %v3568_v33  ;;  %v516_v33 = vld [vmem:[%s4063_s27 + $0x270] sm:$0xff] }
  0xa4   : > { %1236 = vmatprep.subr.bf16.mxu0 %v3569_v34  ;;  %3269 = vmatprep.subr.bf16.mxu1 %v3569_v34  ;;  %v3610_v34 = vld [vmem:[#allocation5 + $0x1c4] ss:$8 sps:$4 sm:$0xff]  }
  0xa7   : > { %1237 = vmatpush1.bf16.msra.mxu0 %v3571_v35  ;;  %3285 = vmatpush1.bf16.msra.mxu1 %v3571_v35  ;;  %v523_v35 = vld [vmem:[%s4063_s27 + $0x2a8] sm:$0xff] }
  0xa8   : > { %1339 = vmatprep.subr.bf16.mxu0 %v3574_v38  ;;  %v594_v38 = vpack.c.bf16 %v516_v33, %v510_v32  ;;  %v601_v40 = vpack.c.bf16 %v529_v36, %v523_v35  ;;  %v3640_v32 = vld [vmem:[#allocation5 + $0x264] ss:$8 sps:$4 sm:$0xff]   ;;  %v489_v33 = vld [vmem:[%s4063_s27 + $0x198] sm:$0xff]  ;;  %v3638_v36 = vld [vmem:[#allocation5 + $0x260] ss:$8 sps:$4 sm:$0xff]  }
  0xaa   : > { %1239 = vmatmul.mubr.bf16.vlgmr.msra.gmra.mrb[0].mxu0 %v558_v41  ;;  %v3611_v41 = vld [vmem:[#allocation5 + $0x1d0] ss:$8 sps:$4 sm:$0xff]  }
  0xab   : > { %1340 = vmatpush1.bf16.msra.mxu0 %v3572_v42  ;;  %1248 = vmatprep.mubr.bf16.mxu0 %v565_v43  ;;  %v522_v42 = vld [vmem:[%s4063_s27 + $0x2a0] sm:$0xff]  ;;  %v528_v43 = vld [vmem:[%s4063_s27 + $0x2d0] sm:$0xff] }
  0xac   : > { %1341 = vmatprep.subr.bf16.mxu0 %v3577_v44  ;;  %v3616_v44 = vld [vmem:[#allocation5 + $0x1e4] ss:$8 sps:$4 sm:$0xff]   ;;  %v600_v47 = vpack.c.bf16 %v528_v43, %v522_v42  ;;  %v488_v42 = vld [vmem:[%s4063_s27 + $0x190] sm:$0xff] }
  0xad   : > { %v494_v43 = vld [vmem:[%s4063_s27 + $0x1c0] sm:$0xff] }
  0xaf   : > { %1342 = vmatpush1.bf16.msra.mxu0 %v3575_v45  ;;  %v441_v45 = vld [vmem:[%s4063_s27 + $0x18] sm:$0xff] }
  0xb0   : > { %1343 = vmatprep.subr.bf16.mxu0 %v3580_v48  ;;  %v3614_v48 = vld [vmem:[#allocation5 + $0x1e0] ss:$8 sps:$4 sm:$0xff]   ;;  %v561_v49 = vpack.c.bf16 %v447_v46, %v441_v45  ;;  %v501_v45 = vld [vmem:[%s4063_s27 + $0x1f8] sm:$0xff] }
  0xb1   : > { %v507_v46 = vld [vmem:[%s4063_s27 + $0x228] sm:$0xff] }
  0xb2   : > { %1249 = vmatmul.mubr.bf16.gmra.mrb[4].mxu0 %v564_v51  ;;  %v3617_v51 = vld [vmem:[#allocation5 + $0x1f0] ss:$8 sps:$4 sm:$0xff]  }
  0xb3   : > { %1344 = vmatpush1.bf16.msra.mxu0 %v3578_v52  ;;  %1258 = vmatprep.mubr.bf16.mxu0 %v571_v53  ;;  %v440_v52 = vld [vmem:[%s4063_s27 + $0x10] sm:$0xff]  ;;  %v446_v53 = vld [vmem:[%s4063_s27 + $0x40] sm:$0xff] }
  0xb4   : > { %1345 = vmatprep.subr.bf16.mxu0 %v3583_v54  ;;  %v3622_v54 = vld [vmem:[#allocation5 + $0x204] ss:$8 sps:$4 sm:$0xff]   ;;  %v560_v57 = vpack.c.bf16 %v446_v53, %v440_v52  ;;  %v3644_v52 = vld [vmem:[#allocation5 + $0x280] ss:$8 sps:$4 sm:$0xff]   ;;  %v3649_v53 = vld [vmem:[#allocation5 + $0x294] ss:$8 sps:$4 sm:$0xff]  }
  0xb7   : > { %1346 = vmatpush1.bf16.msra.mxu0 %v3581_v55  ;;  %v453_v55 = vld [vmem:[%s4063_s27 + $0x78] sm:$0xff] }
  0xb8   : > { %1347 = vmatprep.subr.bf16.mxu0 %v3586_v58  ;;  %v3620_v58 = vld [vmem:[#allocation5 + $0x200] ss:$8 sps:$4 sm:$0xff]   ;;  %v567_v59 = vpack.c.bf16 %v459_v56, %v453_v55  ;;  %v3674_v55 = vld [vmem:[%s4601_s3 + $0x58] sm:$0xff]  }
  0xb9   : > { %v500_v56 = vld [vmem:[%s4063_s27 + $0x1f0] sm:$0xff] }
  0xba   : > { %1259 = vmatmul.mubr.bf16.gmra.mrb[8].mxu0 %v570_v61  ;;  %v3623_v61 = vld [vmem:[#allocation5 + $0x210] ss:$8 sps:$4 sm:$0xff]  }
  0xbb   : > { %1348 = vmatpush1.bf16.msra.mxu0 %v3584_v62  ;;  %1268 = vmatprep.mubr.bf16.mxu0 %v577_v63  ;;  %v452_v62 = vld [vmem:[%s4063_s27 + $0x70] sm:$0xff]  ;;  %v458_v63 = vld [vmem:[%s4063_s27 + $0xa0] sm:$0xff] }
  0xbc   : > { %1349 = vmatprep.subr.bf16.mxu0 %v3589_v0  ;;  %v3628_v0 = vld [vmem:[#allocation5 + $0x224] ss:$8 sps:$4 sm:$0xff]   ;;  %v566_v3 = vpack.c.bf16 %v458_v63, %v452_v62  ;;  %v3675_v62 = vld [vmem:[%s4601_s3 + $0x18] sm:$0xff]  }
  0xbf   : > { %1350 = vmatpush1.bf16.msra.mxu0 %v3587_v1  ;;  %v465_v1 = vld [vmem:[%s4063_s27 + $0xd8] sm:$0xff] }
  0xc0   : > { %1351 = vmatprep.subr.bf16.mxu0 %v3592_v4  ;;  %v3626_v4 = vld [vmem:[#allocation5 + $0x220] ss:$8 sps:$4 sm:$0xff]   ;;  %v573_v5 = vpack.c.bf16 %v471_v2, %v465_v1 }
  0xc1   : > { %v3650_v2 = vld [vmem:[#allocation5 + $0x2a0] ss:$8 sps:$4 sm:$0xff]  }
  0xc2   : > { %1269 = vmatmul.mubr.bf16.gmra.mrb[12].mxu0 %v576_v7  ;;  %v535_v7 = vld [vmem:[%s4063_s27 + $0x308] sm:$0xff] }
  0xc3   : > { %1352 = vmatpush1.bf16.msra.mxu0 %v3590_v8  ;;  %1278 = vmatprep.mubr.bf16.mxu0 %v583_v9  ;;  %v541_v8 = vld [vmem:[%s4063_s27 + $0x338] sm:$0xff] }
  0xc4   : > { %1353 = vmatprep.subr.bf16.mxu0 %v3595_v10  ;;  %v607_v9 = vpack.c.bf16 %v541_v8, %v535_v7  ;;  %v534_v10 = vld [vmem:[%s4063_s27 + $0x300] sm:$0xff]  ;;  %v3653_v8 = vld [vmem:[#allocation5 + $0x2b0] ss:$8 sps:$4 sm:$0xff]  }
  0xc5   : > { %v518_v7 = vld [vmem:[%s4063_s27 + $0x280] sm:$0xff] }
  0xc6   : > { %1318 = vmatprep.mubr.bf16.mxu1 %v607_v9  ;;  %v525_v9 = vld [vmem:[%s4063_s27 + $0x2b8] sm:$0xff] }
  0xc7   : > { %1354 = vmatpush1.bf16.msra.mxu0 %v3593_v11  ;;  %v540_v11 = vld [vmem:[%s4063_s27 + $0x330] sm:$0xff] }
  0xc8   : > { %1355 = vmatprep.subr.bf16.mxu0 %v3598_v14  ;;  %v470_v14 = vld [vmem:[%s4063_s27 + $0x100] sm:$0xff]  ;;  %v606_v15 = vpack.c.bf16 %v540_v11, %v534_v10  ;;  %v531_v10 = vld [vmem:[%s4063_s27 + $0x2e8] sm:$0xff] }
  0xc9   : > { %v3658_v11 = vld [vmem:[#allocation5 + $0x2c4] ss:$8 sps:$4 sm:$0xff]  }
  0xca   : > { %1279 = vmatmul.mubr.bf16.gmra.mrb[16].mxu0 %v582_v18  ;;  %v483_v18 = vld [vmem:[%s4063_s27 + $0x168] sm:$0xff]  ;;  %1319 = vmatmul.mubr.bf16.vlgmr.msra.gmra.mrb[0].mxu1 %v606_v15  ;;  %v3661_v15 = vld [vmem:[#allocation5 + $0x2d4] ss:$8 sps:$4 sm:$0xff]  }
  0xcb   : > { %1356 = vmatpush1.bf16.msra.mxu0 %v3596_v17  ;;  %1288 = vmatprep.mubr.bf16.mxu0 %v589_v20  ;;  %v477_v17 = vld [vmem:[%s4063_s27 + $0x138] sm:$0xff]  ;;  %v3632_v20 = vld [vmem:[#allocation5 + $0x240] ss:$8 sps:$4 sm:$0xff]  }
  0xcc   : > { %1357 = vmatprep.subr.bf16.mxu0 %v3601_v19  ;;  %v572_v19 = vpack.c.bf16 %v470_v14, %v464_v13  ;;  %v603_v13 = vpack.c.bf16 %v531_v10, %v525_v9  ;;  %v3656_v14 = vld [vmem:[#allocation5 + $0x2c0] ss:$8 sps:$4 sm:$0xff]  }
  0xcf   : > { %1358 = vmatpush1.bf16.msra.mxu0 %v3599_v21  ;;  %v579_v21 = vpack.c.bf16 %v483_v18, %v477_v17  ;;  %v530_v17 = vld [vmem:[%s4063_s27 + $0x2e0] sm:$0xff]  ;;  %v3659_v18 = vld [vmem:[#allocation5 + $0x2d0] ss:$8 sps:$4 sm:$0xff]  }
  0xd0   : > { %1359 = vmatprep.subr.bf16.mxu0 %v3604_v24  ;;  %v553_v24 = vld [vmem:[%s4063_s27 + $0x398] sm:$0xff] }
  0xd1   : > { %v613_v25 = vpack.c.bf16 %v553_v24, %v547_v23  ;;  %v3662_v24 = vld [vmem:[#allocation5 + $0x2e0] ss:$8 sps:$4 sm:$0xff]  }
  0xd2   : > { %1289 = vmatmul.mubr.bf16.gmra.mrb[20].mxu0 %v588_v28  ;;  %v476_v28 = vld [vmem:[%s4063_s27 + $0x130] sm:$0xff] }
  0xd3   : > { %1360 = vmatpush1.bf16.msra.mxu0 %v3602_v27  ;;  %1298 = vmatprep.mubr.bf16.mxu0 %v595_v30  ;;  %v552_v27 = vld [vmem:[%s4063_s27 + $0x390] sm:$0xff] }
  0xd4   : > { %1361 = vmatprep.subr.bf16.mxu0 %v3607_v29  ;;  %v482_v29 = vld [vmem:[%s4063_s27 + $0x160] sm:$0xff]  ;;  %v3635_v30 = vld [vmem:[#allocation5 + $0x250] ss:$8 sps:$4 sm:$0xff]   ;;  %1328 = vmatprep.mubr.bf16.mxu1 %v613_v25  ;;  %v3667_v25 = vld [vmem:[#allocation5 + $0x2f4] ss:$8 sps:$4 sm:$0xff]  }
  0xd5   : > { %v578_v35 = vpack.c.bf16 %v482_v29, %v476_v28  ;;  %v3665_v28 = vld [vmem:[#allocation5 + $0x2f0] ss:$8 sps:$4 sm:$0xff]  }
  0xd6   : > { %v549_v29 = vld [vmem:[%s4063_s27 + $0x378] sm:$0xff] }
  0xd7   : > { %1362 = vmatpush1.bf16.msra.mxu0 %v3605_v31  ;;  %v612_v31 = vpack.c.bf16 %v552_v27, %v546_v26  ;;  %v536_v26 = vld [vmem:[%s4063_s27 + $0x310] sm:$0xff]  ;;  %v542_v27 = vld [vmem:[%s4063_s27 + $0x340] sm:$0xff] }
  0xd8   : > { %1363 = vmatprep.subr.bf16.mxu0 %v3610_v34  ;;  %v495_v34 = vld [vmem:[%s4063_s27 + $0x1c8] sm:$0xff] }
  0xd9   : > { %1329 = vmatmul.mubr.bf16.gmra.mrb[4].mxu1 %v612_v31  ;;  %v608_v31 = vpack.c.bf16 %v542_v27, %v536_v26  ;;  %v557_v26 = vld [vmem:[%s4063_s27 + $0x3b8] sm:$0xff] }
  0xda   : > { %1299 = vmatmul.mubr.bf16.gmra.mrb[24].mxu0 %v594_v38  ;;  %v3643_v38 = vld [vmem:[#allocation5 + $0x274] ss:$8 sps:$4 sm:$0xff]  }
  0xdb   : > { %1364 = vmatpush1.bf16.msra.mxu0 %v3608_v37  ;;  %1308 = vmatprep.mubr.bf16.mxu0 %v601_v40  ;;  %v585_v37 = vpack.c.bf16 %v495_v34, %v489_v33  ;;  %v3669_v40 = vld [vmem:[%s4601_s3] sm:$0xff]   ;;  %v548_v33 = vld [vmem:[%s4063_s27 + $0x370] sm:$0xff] }
  0xdc   : > { %1365 = vmatprep.subr.bf16.mxu0 %v3613_v39  ;;  %v3668_v39 = vld [vmem:[%s4601_s3 + $0x40] sm:$0xff]  }
  0xdd   : > { %3046 = vmatprep.subr.bf16.mxu1 %v3668_v39  ;;  %v554_v34 = vld [vmem:[%s4063_s27 + $0x3a0] sm:$0xff] }
  0xde   : > { %3047 = vmatpush3.bf16.msra.mxu1 %v3669_v40  ;;  %v442_v39 = vld [vmem:[%s4063_s27 + $0x20] sm:$0xff]  ;;  %v448_v40 = vld [vmem:[%s4063_s27 + $0x50] sm:$0xff] }
  0xdf   : > { %1366 = vmatpush1.bf16.msra.mxu0 %v3611_v41  ;;  %v3670_v41 = vld [vmem:[%s4601_s3 + $0x48] sm:$0xff]  }
  0xe0   : > { %1367 = vmatprep.subr.bf16.mxu0 %v3616_v44  ;;  %v3641_v44 = vld [vmem:[#allocation5 + $0x270] ss:$8 sps:$4 sm:$0xff]   ;;  %3048 = vmatprep.subr.bf16.mxu1 %v3670_v41  ;;  %v455_v41 = vld [vmem:[%s4063_s27 + $0x88] sm:$0xff] }
  0xe2   : > { %1309 = vmatmul.mubr.bf16.gmra.mrb[28].mxu0 %v600_v47  ;;  %v3646_v47 = vld [vmem:[#allocation5 + $0x284] ss:$8 sps:$4 sm:$0xff]  }
  0xe3   : > { %1368 = vmatpush1.bf16.msra.mxu0 %v3614_v48  ;;  %1371 = vmatprep.mubr.bf16.mxu0 %v561_v49  ;;  %v3671_v48 = vld [vmem:[%s4601_s3 + $0x8] sm:$0xff]   ;;  %v584_v49 = vpack.c.bf16 %v494_v43, %v488_v42  ;;  %v461_v42 = vld [vmem:[%s4063_s27 + $0xb8] sm:$0xff]  ;;  %v562_v43 = vpack.c.bf16 %v448_v40, %v442_v39 }
  0xe4   : > { %1369 = vmatprep.subr.bf16.mxu0 %v3619_v50  ;;  %v3672_v50 = vld [vmem:[%s4601_s3 + $0x50] sm:$0xff]   ;;  %3049 = vmatpush3.bf16.msra.mxu1 %v3671_v48  ;;  %v473_v48 = vld [vmem:[%s4063_s27 + $0x118] sm:$0xff] }
  0xe5   : > { %3050 = vmatprep.subr.bf16.mxu1 %v3672_v50 }
  0xe7   : > { %1370 = vmatpush1.bf16.msra.mxu0 %v3617_v51  ;;  %v591_v51 = vpack.c.bf16 %v507_v46, %v501_v45  ;;  %v454_v45 = vld [vmem:[%s4063_s27 + $0x80] sm:$0xff]  ;;  %v460_v46 = vld [vmem:[%s4063_s27 + $0xb0] sm:$0xff] }
  0xe8   : > { %1472 = vmatprep.subr.bf16.mxu0 %v3622_v54  ;;  %v3673_v54 = vld [vmem:[%s4601_s3 + $0x10] sm:$0xff]  }
  0xe9   : > { %3051 = vmatpush3.bf16.msra.mxu1 %v3673_v54  ;;  %v485_v54 = vld [vmem:[%s4063_s27 + $0x178] sm:$0xff] }
  0xea   : > { %1372 = vmatmul.mubr.bf16.vlgmr.msra.gmra.mrb[0].mxu0 %v560_v57  ;;  %v506_v57 = vld [vmem:[%s4063_s27 + $0x220] sm:$0xff]  ;;  %3052 = vmatprep.subr.bf16.mxu1 %v3674_v55 }
  0xeb   : > { %1473 = vmatpush1.bf16.msra.mxu0 %v3620_v58  ;;  %1381 = vmatprep.mubr.bf16.mxu0 %v567_v59  ;;  %v3647_v58 = vld [vmem:[#allocation5 + $0x290] ss:$8 sps:$4 sm:$0xff]   ;;  %v590_v63 = vpack.c.bf16 %v506_v57, %v500_v56  ;;  %v478_v57 = vld [vmem:[%s4063_s27 + $0x140] sm:$0xff] }
  0xec   : > { %1474 = vmatprep.subr.bf16.mxu0 %v3625_v60  ;;  %v513_v59 = vld [vmem:[%s4063_s27 + $0x258] sm:$0xff]  ;;  %v519_v60 = vld [vmem:[%s4063_s27 + $0x288] sm:$0xff] }
  0xed   : > { %v597_v1 = vpack.c.bf16 %v519_v60, %v513_v59  ;;  %3053 = vmatpush3.bf16.msra.mxu1 %v3675_v62  ;;  %v491_v59 = vld [vmem:[%s4063_s27 + $0x1a8] sm:$0xff]  ;;  %v497_v60 = vld [vmem:[%s4063_s27 + $0x1d8] sm:$0xff] }
  0xee   : > { %v587_v62 = vpack.c.bf16 %v497_v60, %v491_v59 }
  0xef   : > { %1475 = vmatpush1.bf16.msra.mxu0 %v3623_v61  ;;  %v3652_v61 = vld [vmem:[#allocation5 + $0x2a4] ss:$8 sps:$4 sm:$0xff]  }
  0xf0   : > { %1476 = vmatprep.subr.bf16.mxu0 %v3628_v0  ;;  %v3676_v0 = vld [vmem:[%s4601_s3 + $0x60] sm:$0xff]  }
  0xf1   : > { %3054 = vmatprep.subr.bf16.mxu1 %v3676_v0  ;;  %v496_v0 = vld [vmem:[%s4063_s27 + $0x1d0] sm:$0xff] }
  0xf2   : > { %1382 = vmatmul.mubr.bf16.gmra.mrb[4].mxu0 %v566_v3  ;;  %v3655_v3 = vld [vmem:[#allocation5 + $0x2b4] ss:$8 sps:$4 sm:$0xff]  }
  0xf3   : > { %1477 = vmatpush1.bf16.msra.mxu0 %v3626_v4  ;;  %1391 = vmatprep.mubr.bf16.mxu0 %v573_v5  ;;  %v3677_v4 = vld [vmem:[%s4601_s3 + $0x20] sm:$0xff]   ;;  %v3678_v5 = vld [vmem:[%s4601_s3 + $0x68] sm:$0xff]  }
  0xf4   : > { %1478 = vmatprep.subr.bf16.mxu0 %v3631_v6  ;;  %v512_v6 = vld [vmem:[%s4063_s27 + $0x250] sm:$0xff]  ;;  %3055 = vmatpush3.bf16.msra.mxu1 %v3677_v4 }
  0xf5   : > { %3056 = vmatprep.subr.bf16.mxu1 %v3678_v5  ;;  %v502_v5 = vld [vmem:[%s4063_s27 + $0x200] sm:$0xff] }
  0xf7   : > { %1479 = vmatpush1.bf16.msra.mxu0 %v3629_v12  ;;  %v596_v12 = vpack.c.bf16 %v518_v7, %v512_v6  ;;  %v508_v6 = vld [vmem:[%s4063_s27 + $0x230] sm:$0xff]  ;;  %v515_v7 = vld [vmem:[%s4063_s27 + $0x268] sm:$0xff] }
  0xf8   : > { %1480 = vmatprep.subr.bf16.mxu0 %v3634_v16  ;;  %v524_v16 = vld [vmem:[%s4063_s27 + $0x2b0] sm:$0xff]  ;;  %v592_v9 = vpack.c.bf16 %v508_v6, %v502_v5  ;;  %v3685_v6 = vld [vmem:[%s4603_s5 + $0x8] sm:$0xff]  }
  0xfa   : > { %1392 = vmatmul.mubr.bf16.gmra.mrb[8].mxu0 %v572_v19  ;;  %v537_v19 = vld [vmem:[%s4063_s27 + $0x318] sm:$0xff] }
  0xfb   : > { %1481 = vmatpush1.bf16.msra.mxu0 %v3632_v20  ;;  %1401 = vmatprep.mubr.bf16.mxu0 %v579_v21  ;;  %v543_v20 = vld [vmem:[%s4063_s27 + $0x348] sm:$0xff] }
  0xfc   : > { %1482 = vmatprep.subr.bf16.mxu0 %v3637_v22  ;;  %v3664_v21 = vld [vmem:[#allocation5 + $0x2e4] ss:$8 sps:$4 sm:$0xff]   ;;  %v602_v22 = vpack.c.bf16 %v530_v17, %v524_v16  ;;  %v609_v23 = vpack.c.bf16 %v543_v20, %v537_v19  ;;  %v545_v20 = vld [vmem:[%s4063_s27 + $0x358] sm:$0xff] }
  0xfd   : > { %v526_v17 = vld [vmem:[%s4063_s27 + $0x2c0] sm:$0xff]  ;;  %v539_v19 = vld [vmem:[%s4063_s27 + $0x328] sm:$0xff] }
  0xff   : > { %1483 = vmatpush1.bf16.msra.mxu0 %v3635_v30  ;;  %v555_v30 = vld [vmem:[%s4063_s27 + $0x3a8] sm:$0xff] }
 0x100   : > { %1484 = vmatprep.subr.bf16.mxu0 %v3640_v32  ;;  %v615_v32 = vpack.c.bf16 %v555_v30, %v549_v29  ;;  %v550_v29 = vld [vmem:[%s4063_s27 + $0x380] sm:$0xff]  ;;  %v556_v30 = vld [vmem:[%s4063_s27 + $0x3b0] sm:$0xff] }
 0x102   : > { %1402 = vmatmul.mubr.bf16.gmra.mrb[12].mxu0 %v578_v35  ;;  %v443_v35 = vld [vmem:[%s4063_s27 + $0x28] sm:$0xff] }
 0x103   : > { %1411 = vmatprep.mubr.bf16.mxu0 %v585_v37  ;;  %1485 = vmatpush1.bf16.msra.mxu0 %v3638_v36  ;;  %v449_v36 = vld [vmem:[%s4063_s27 + $0x58] sm:$0xff]  ;;  %v614_v37 = vpack.c.bf16 %v554_v34, %v548_v33  ;;  %v3680_v33 = vld [vmem:[%s4601_s3 + $0x70] sm:$0xff]  }
 0x104   : > { %1486 = vmatprep.subr.bf16.mxu0 %v3643_v38  ;;  %v563_v38 = vpack.c.bf16 %v449_v36, %v443_v35  ;;  %v3681_v34 = vld [vmem:[%s4601_s3 + $0x30] sm:$0xff]   ;;  %v3682_v35 = vld [vmem:[%s4601_s3 + $0x78] sm:$0xff]  }
 0x105   : > { %v3683_v36 = vld [vmem:[%s4601_s3 + $0x38] sm:$0xff]  }
 0x107   : > { %1487 = vmatpush1.bf16.msra.mxu0 %v3641_v44  ;;  %v569_v44 = vpack.c.bf16 %v461_v42, %v455_v41 }
 0x108   : > { %1488 = vmatprep.subr.bf16.mxu0 %v3646_v47  ;;  %v467_v47 = vld [vmem:[%s4063_s27 + $0xe8] sm:$0xff] }
 0x109   : > { %v575_v50 = vpack.c.bf16 %v473_v48, %v467_v47 }
 0x10a   : > { %1412 = vmatmul.mubr.bf16.gmra.mrb[16].mxu0 %v584_v49  ;;  %v568_v49 = vpack.c.bf16 %v460_v46, %v454_v45  ;;  %v3684_v45 = vld [vmem:[%s4603_s5] sm:$0xff]   ;;  %v716_v46 = vlaneseq }
 0x10b   : > { %1421 = vmatprep.mubr.bf16.mxu0 %v591_v51  ;;  %1489 = vmatpush1.bf16.msra.mxu0 %v3644_v52  ;;  %v466_v51 = vld [vmem:[%s4063_s27 + $0xe0] sm:$0xff]  ;;  %v472_v52 = vld [vmem:[%s4063_s27 + $0x110] sm:$0xff] }
 0x10c   : > { %1490 = vmatprep.subr.bf16.mxu0 %v3649_v53  ;;  %v479_v53 = vld [vmem:[%s4063_s27 + $0x148] sm:$0xff]  ;;  %v574_v55 = vpack.c.bf16 %v472_v52, %v466_v51  ;;  %v717_v47 = vshrl.u32 %v716_v46, 7 }
 0x10d   : > { %v581_v56 = vpack.c.bf16 %v485_v54, %v479_v53 }
 0x10e   : > { %v718_v48 = vsub.s32 0, %v717_v47 }
 0x10f   : > { %1491 = vmatpush1.bf16.msra.mxu0 %v3647_v58  ;;  %v484_v58 = vld [vmem:[%s4063_s27 + $0x170] sm:$0xff] }
 0x110   : > { %1492 = vmatprep.subr.bf16.mxu0 %v3652_v61  ;;  %v580_v61 = vpack.c.bf16 %v484_v58, %v478_v57 }
 0x112   : > { %1422 = vmatmul.mubr.bf16.gmra.mrb[20].mxu0 %v590_v63  ;;  %v490_v63 = vld [vmem:[%s4063_s27 + $0x1a0] sm:$0xff] }
 0x113   : > { %1431 = vmatprep.mubr.bf16.mxu0 %v597_v1  ;;  %1493 = vmatpush1.bf16.msra.mxu0 %v3650_v2  ;;  %v503_v1 = vld [vmem:[%s4063_s27 + $0x208] sm:$0xff]  ;;  %v509_v2 = vld [vmem:[%s4063_s27 + $0x238] sm:$0xff] }
 0x114   : > { %1494 = vmatprep.subr.bf16.mxu0 %v3655_v3  ;;  %v586_v3 = vpack.c.bf16 %v496_v0, %v490_v63  ;;  %v593_v4 = vpack.c.bf16 %v509_v2, %v503_v1 }
 0x117   : > { %1495 = vmatpush1.bf16.msra.mxu0 %v3653_v8  ;;  %v521_v8 = vld [vmem:[%s4063_s27 + $0x298] sm:$0xff] }
 0x118   : > { %1496 = vmatprep.subr.bf16.mxu0 %v3658_v11  ;;  %v599_v10 = vpack.c.bf16 %v521_v8, %v515_v7  ;;  %v514_v11 = vld [vmem:[%s4063_s27 + $0x260] sm:$0xff] }
 0x11a   : > { %1432 = vmatmul.mubr.bf16.gmra.mrb[24].mxu0 %v596_v12  ;;  %v520_v12 = vld [vmem:[%s4063_s27 + $0x290] sm:$0xff] }
 0x11b   : > { %1441 = vmatprep.mubr.bf16.mxu0 %v603_v13  ;;  %1497 = vmatpush1.bf16.msra.mxu0 %v3656_v14  ;;  %v527_v13 = vld [vmem:[%s4063_s27 + $0x2c8] sm:$0xff]  ;;  %v533_v14 = vld [vmem:[%s4063_s27 + $0x2f8] sm:$0xff] }
 0x11c   : > { %1498 = vmatprep.subr.bf16.mxu0 %v3661_v15  ;;  %v598_v15 = vpack.c.bf16 %v520_v12, %v514_v11  ;;  %v605_v16 = vpack.c.bf16 %v533_v14, %v527_v13  ;;  %v3686_v14 = vld [vmem:[%s4603_s5 + $0x10] sm:$0xff]  }
 0x11f   : > { %1499 = vmatpush1.bf16.msra.mxu0 %v3659_v18  ;;  %v532_v18 = vld [vmem:[%s4063_s27 + $0x2f0] sm:$0xff] }
 0x120   : > { %1500 = vmatprep.subr.bf16.mxu0 %v3664_v21  ;;  %v604_v21 = vpack.c.bf16 %v532_v18, %v526_v17 }
 0x122   : > { %1442 = vmatmul.mubr.bf16.gmra.mrb[28].mxu0 %v602_v22  ;;  %v611_v22 = vpack.c.bf16 %v545_v20, %v539_v19 }
 0x123   : > { %1451 = vmatprep.mubr.bf16.mxu0 %v609_v23  ;;  %1501 = vmatpush1.bf16.msra.mxu0 %v3662_v24  ;;  %v538_v23 = vld [vmem:[%s4063_s27 + $0x320] sm:$0xff]  ;;  %v544_v24 = vld [vmem:[%s4063_s27 + $0x350] sm:$0xff] }
 0x124   : > { %1502 = vmatprep.subr.bf16.mxu0 %v3667_v25  ;;  %v551_v25 = vld [vmem:[%s4063_s27 + $0x388] sm:$0xff]  ;;  %v610_v27 = vpack.c.bf16 %v544_v24, %v538_v23 }
 0x127   : > { %1503 = vmatpush1.bf16.msra.mxu0 %v3665_v28  ;;  %v617_v28 = vpack.c.bf16 %v557_v26, %v551_v25 }
 0x12a   : > { %1452 = vmatmul.mubr.bf16.gmra.mrb[32].mxu0 %v608_v31  ;;  %v616_v31 = vpack.c.bf16 %v556_v30, %v550_v29 }
 0x12b   : > { %1461 = vmatprep.mubr.bf16.mxu0 %v615_v32  ;;  %v3679_v32 = vld [vmem:[%s4601_s3 + $0x28] sm:$0xff]  }
 0x12c   : > { %3057 = vmatpush3.bf16.msra.mxu1 %v3679_v32 }
 0x12d   : > { %3058 = vmatprep.subr.bf16.mxu1 %v3680_v33 }
 0x130   : > { %3059 = vmatpush3.bf16.msra.mxu1 %v3681_v34 }
 0x131   : > { %3060 = vmatprep.subr.bf16.mxu1 %v3682_v35 }
 0x132   : > { %1462 = vmatmul.mubr.bf16.gmra.mrb[36].mxu0 %v614_v37 }
 0x133   : > { %1504 = vmatprep.mubr.bf16.mxu0 %v563_v38 }
 0x134   : > { %3061 = vmatpush3.bf16.msra.mxu1 %v3683_v36 }
 0x135   : > { %3166 = vmatprep.subr.bf16.mxu1 %v3684_v45 }
 0x13a   : > { %1505 = vmatmul.mubr.bf16.vlgmr.msra.gmra.mrb[0].mxu0 %v562_v43 }
 0x13b   : > { %1514 = vmatprep.mubr.bf16.mxu0 %v569_v44 }
 0x142   : > { %1515 = vmatmul.mubr.bf16.gmra.mrb[4].mxu0 %v568_v49  ;;  %v714_v49 = vld [vmem:[%s4600_s2] sm:$0x3] }
 0x143   : > { %1524 = vmatprep.mubr.bf16.mxu0 %v575_v50  ;;  %v722_v50 = vsub.s32 1, %v717_v47  ;;  %v4263_v51 = vrot.slane %v714_v49, %v718_v48 }
 0x145   : > { %v4265_v52 = vrot.slane %v714_v49, %v722_v50 }
 0x14a   : > { %1525 = vmatmul.mubr.bf16.gmra.mrb[8].mxu0 %v574_v55 }
 0x14b   : > { %1534 = vmatprep.mubr.bf16.mxu0 %v581_v56 }
 0x152   : > { %1535 = vmatmul.mubr.bf16.gmra.mrb[12].mxu0 %v580_v61 }
 0x153   : > { %1544 = vmatprep.mubr.bf16.mxu0 %v587_v62 }
 0x15a   : > { %1545 = vmatmul.mubr.bf16.gmra.mrb[16].mxu0 %v586_v3 }
 0x15b   : > { %1554 = vmatprep.mubr.bf16.mxu0 %v593_v4 }
 0x162   : > { %1555 = vmatmul.mubr.bf16.gmra.mrb[20].mxu0 %v592_v9 }
 0x163   : > { %1564 = vmatprep.mubr.bf16.mxu0 %v599_v10 }
 0x16a   : > { %1565 = vmatmul.mubr.bf16.gmra.mrb[24].mxu0 %v598_v15 }
 0x16b   : > { %1574 = vmatprep.mubr.bf16.mxu0 %v605_v16 }
 0x172   : > { %1575 = vmatmul.mubr.bf16.gmra.mrb[28].mxu0 %v604_v21 }
 0x173   : > { %1584 = vmatprep.mubr.bf16.mxu0 %v611_v22 }
 0x17a   : > { %1585 = vmatmul.mubr.bf16.gmra.mrb[32].mxu0 %v610_v27 }
 0x17b   : > { %1594 = vmatprep.mubr.bf16.mxu0 %v617_v28 }
 0x182   : > { %1595 = vmatmul.mubr.bf16.gmra.mrb[36].mxu0 %v616_v31 }
 0x19d   : > { %v4241_v37 = vpop.f32.mrb[0].mxu1 }
 0x19e   : > { %v4243_v38 = vpop.f32.mrb[1].mxu1 }
 0x19f   : > { %v4245_v39 = vpop.f32.mrb[2].mxu1 }
 0x1a0   : > { %v4247_v40 = vpop.f32.mrb[3].mxu1 }
 0x1ac   : > { %v4249_v41 = vpop.f32.mrb[4].mxu1 }
 0x1ad   : > { %v4251_v42 = vpop.f32.mrb[5].mxu1 }
 0x1ae   : > { %v4253_v43 = vpop.f32.mrb[6].mxu1 }
 0x1af   : > { %v4255_v44 = vpop.f32.mrb[7].mxu1 }
 0x20d   : > { %v1506_v53 = vpop.f32.mrb[0].mxu0 }
 0x20e   : > { %v3286_v54 = vadd.f32 %v1506_v53, %v4263_v51  ;;  %v1508_v55 = vpop.f32.mrb[1].mxu0 }
 0x20f   : > { %v3287_v56 = vadd.f32 %v1508_v55, %v4265_v52  ;;  %v1510_v57 = vpop.f32.mrb[2].mxu0 }
 0x210   : > { %v3288_v58 = vadd.f32 %v1510_v57, %v4263_v51  ;;  %v1512_v59 = vpop.f32.mrb[3].mxu0  ;;  %v1605_v61 = vmax.f32 %v3286_v54, 0.0 }
 0x211   : > { %v3289_v60 = vadd.f32 %v1512_v59, %v4265_v52  ;;  %v1606_v63 = vmax.f32 %v3287_v56, 0.0 }
 0x212   : > { %v1607_v62 = vmax.f32 %v3288_v58, 0.0 }
 0x213   : > { %v1608_v0 = vmax.f32 %v3289_v60, 0.0 }
 0x214   : > { %v1645_v1 = vpack.c.bf16 %v1607_v62, %v1605_v61 }
 0x215   : > { %v1646_v2 = vpack.c.bf16 %v1608_v0, %v1606_v63  ;;  %v1516_v3 = vpop.f32.mrb[4].mxu0 }
 0x216   : > { %v3290_v4 = vadd.f32 %v1516_v3, %v4263_v51  ;;  %v1518_v5 = vpop.f32.mrb[5].mxu0 }
 0x217   : > { %v3291_v7 = vadd.f32 %v1518_v5, %v4265_v52  ;;  %v1520_v8 = vpop.f32.mrb[6].mxu0  ;;  %1832 = vmatprep.mubr.bf16.mxu1 %v1646_v2 }
 0x218   : > { %v3292_v9 = vadd.f32 %v1520_v8, %v4263_v51  ;;  %v1522_v10 = vpop.f32.mrb[7].mxu0  ;;  %1833 = vmatmul.mubr.bf16.vlgmr.msra.gmra.mrb[8].mxu1 %v1645_v1  ;;  %v1609_v12 = vmax.f32 %v3290_v4, 0.0 }
 0x219   : > { %v3293_v11 = vadd.f32 %v1522_v10, %v4265_v52  ;;  %3167 = vmatpush3.bf16.msra.mxu1 %v3684_v45  ;;  %v1610_v15 = vmax.f32 %v3291_v7, 0.0 }
 0x21a   : > { %v1611_v13 = vmax.f32 %v3292_v9, 0.0  ;;  %3168 = vmatprep.subr.bf16.mxu1 %v3685_v6 }
 0x21b   : > { %v1612_v16 = vmax.f32 %v3293_v11, 0.0 }
 0x21c   : > { %v1647_v17 = vpack.c.bf16 %v1611_v13, %v1609_v12 }
 0x21d   : > { %v1648_v18 = vpack.c.bf16 %v1612_v16, %v1610_v15  ;;  %v1526_v19 = vpop.f32.mrb[8].mxu0  ;;  %3169 = vmatpush3.bf16.msra.mxu1 %v3685_v6 }
 0x21e   : > { %v3294_v20 = vadd.f32 %v1526_v19, %v4263_v51  ;;  %v1528_v21 = vpop.f32.mrb[9].mxu0  ;;  %3170 = vmatprep.subr.bf16.mxu1 %v3686_v14 }
 0x21f   : > { %v3295_v22 = vadd.f32 %v1528_v21, %v4265_v52  ;;  %v1530_v23 = vpop.f32.mrb[10].mxu0  ;;  %1840 = vmatprep.mubr.bf16.mxu1 %v1648_v18 }
 0x220   : > { %v3296_v24 = vadd.f32 %v1530_v23, %v4263_v51  ;;  %v1532_v25 = vpop.f32.mrb[11].mxu0  ;;  %1841 = vmatmul.mubr.bf16.gmra.mrb[12].mxu1 %v1647_v17  ;;  %v1613_v27 = vmax.f32 %v3294_v20, 0.0 }
 0x221   : > { %v3297_v26 = vadd.f32 %v1532_v25, %v4265_v52  ;;  %3171 = vmatpush3.bf16.msra.mxu1 %v3686_v14  ;;  %v1614_v29 = vmax.f32 %v3295_v22, 0.0 }
 0x222   : > { %v1615_v28 = vmax.f32 %v3296_v24, 0.0 }
 0x223   : > { %v1616_v30 = vmax.f32 %v3297_v26, 0.0 }
 0x224   : > { %v1649_v31 = vpack.c.bf16 %v1615_v28, %v1613_v27 }
 0x225   : > { %v1650_v32 = vpack.c.bf16 %v1616_v30, %v1614_v29  ;;  %v1536_v33 = vpop.f32.mrb[12].mxu0 }
 0x226   : > { %v3298_v34 = vadd.f32 %v1536_v33, %v4263_v51  ;;  %v1538_v35 = vpop.f32.mrb[13].mxu0 }
 0x227   : > { %v3299_v36 = vadd.f32 %v1538_v35, %v4265_v52  ;;  %v1540_v45 = vpop.f32.mrb[14].mxu0  ;;  %1848 = vmatprep.mubr.bf16.mxu1 %v1650_v32 }
 0x228   : > { %v3300_v46 = vadd.f32 %v1540_v45, %v4263_v51  ;;  %v1542_v47 = vpop.f32.mrb[15].mxu0  ;;  %1849 = vmatmul.mubr.bf16.gmra.mrb[16].mxu1 %v1649_v31  ;;  %v1617_v49 = vmax.f32 %v3298_v34, 0.0 }
 0x229   : > { %v3301_v48 = vadd.f32 %v1542_v47, %v4265_v52  ;;  %v1618_v53 = vmax.f32 %v3299_v36, 0.0 }
 0x22a   : > { %v1619_v50 = vmax.f32 %v3300_v46, 0.0 }
 0x22b   : > { %v1620_v54 = vmax.f32 %v3301_v48, 0.0 }
 0x22c   : > { %v1651_v55 = vpack.c.bf16 %v1619_v50, %v1617_v49 }
 0x22d   : > { %v1652_v56 = vpack.c.bf16 %v1620_v54, %v1618_v53  ;;  %v1546_v57 = vpop.f32.mrb[16].mxu0 }
 0x22e   : > { %v3302_v58 = vadd.f32 %v1546_v57, %v4263_v51  ;;  %v1548_v59 = vpop.f32.mrb[17].mxu0 }
 0x22f   : > { %v3303_v60 = vadd.f32 %v1548_v59, %v4265_v52  ;;  %v1550_v61 = vpop.f32.mrb[18].mxu0  ;;  %1856 = vmatprep.mubr.bf16.mxu1 %v1652_v56 }
 0x230   : > { %v3304_v62 = vadd.f32 %v1550_v61, %v4263_v51  ;;  %v1552_v63 = vpop.f32.mrb[19].mxu0  ;;  %1857 = vmatmul.mubr.bf16.gmra.mrb[20].mxu1 %v1651_v55  ;;  %v1621_v1 = vmax.f32 %v3302_v58, 0.0  ;;  %v1321_v55 = vadd.f32 %v4241_v37, %v4263_v51  ;;  %v1323_v58 = vadd.f32 %v4243_v38, %v4265_v52 }
 0x231   : > { %v3305_v0 = vadd.f32 %v1552_v63, %v4265_v52  ;;  %v1622_v3 = vmax.f32 %v3303_v60, 0.0 }
 0x232   : > { %v1623_v2 = vmax.f32 %v3304_v62, 0.0  ;;  %v1325_v62 = vadd.f32 %v4245_v39, %v4263_v51  ;;  %v1333_v39 = vadd.f32 %v4251_v42, %v4265_v52 }
 0x233   : > { %v1624_v4 = vmax.f32 %v3305_v0, 0.0 }
 0x234   : > { %v1653_v5 = vpack.c.bf16 %v1623_v2, %v1621_v1  ;;  %v1327_v1 = vadd.f32 %v4247_v40, %v4265_v52 }
 0x235   : > { %v1654_v6 = vpack.c.bf16 %v1624_v4, %v1622_v3  ;;  %v1556_v7 = vpop.f32.mrb[20].mxu0 }
 0x236   : > { %v3306_v8 = vadd.f32 %v1556_v7, %v4263_v51  ;;  %v1558_v9 = vpop.f32.mrb[21].mxu0  ;;  %v1331_v7 = vadd.f32 %v4249_v41, %v4263_v51 }
 0x237   : > { %v3307_v10 = vadd.f32 %v1558_v9, %v4265_v52  ;;  %v1560_v11 = vpop.f32.mrb[22].mxu0  ;;  %1864 = vmatprep.mubr.bf16.mxu1 %v1654_v6 }
 0x238   : > { %v3308_v12 = vadd.f32 %v1560_v11, %v4263_v51  ;;  %v1562_v13 = vpop.f32.mrb[23].mxu0  ;;  %1865 = vmatmul.mubr.bf16.gmra.mrb[24].mxu1 %v1653_v5  ;;  %v1625_v15 = vmax.f32 %v3306_v8, 0.0 }
 0x239   : > { %v3309_v14 = vadd.f32 %v1562_v13, %v4265_v52  ;;  %v1626_v17 = vmax.f32 %v3307_v10, 0.0 }
 0x23a   : > { %v1627_v16 = vmax.f32 %v3308_v12, 0.0  ;;  %v1335_v12 = vadd.f32 %v4253_v43, %v4263_v51  ;;  %v3687_v43 = vld [vmem:[%s4603_s5 + $0x18] sm:$0xff]  }
 0x23b   : > { %v1628_v18 = vmax.f32 %v3309_v14, 0.0  ;;  %3172 = vmatprep.subr.bf16.mxu1 %v3687_v43 }
 0x23c   : > { %v1655_v19 = vpack.c.bf16 %v1627_v16, %v1625_v15  ;;  %v1337_v15 = vadd.f32 %v4255_v44, %v4265_v52  ;;  %3173 = vmatpush3.bf16.msra.mxu1 %v3687_v43  ;;  %v3688_v44 = vld [vmem:[%s4603_s5 + $0x20] sm:$0xff]  }
 0x23d   : > { %v1656_v20 = vpack.c.bf16 %v1628_v18, %v1626_v17  ;;  %v1566_v21 = vpop.f32.mrb[24].mxu0  ;;  %3174 = vmatprep.subr.bf16.mxu1 %v3688_v44 }
 0x23e   : > { %v3310_v22 = vadd.f32 %v1566_v21, %v4263_v51  ;;  %v1568_v23 = vpop.f32.mrb[25].mxu0 }
 0x23f   : > { %v3311_v24 = vadd.f32 %v1568_v23, %v4265_v52  ;;  %v1570_v25 = vpop.f32.mrb[26].mxu0  ;;  %1872 = vmatprep.mubr.bf16.mxu1 %v1656_v20 }
 0x240   : > { %v3312_v26 = vadd.f32 %v1570_v25, %v4263_v51  ;;  %v1572_v27 = vpop.f32.mrb[27].mxu0  ;;  %1873 = vmatmul.mubr.bf16.gmra.mrb[28].mxu1 %v1655_v19  ;;  %v1629_v29 = vmax.f32 %v3310_v22, 0.0  ;;  %v3691_v25 = vld [vmem:[%s4603_s5 + $0x38] sm:$0xff]  }
 0x241   : > { %v3313_v28 = vadd.f32 %v1572_v27, %v4265_v52  ;;  %v1630_v31 = vmax.f32 %v3311_v24, 0.0  ;;  %3175 = vmatpush3.bf16.msra.mxu1 %v3688_v44 }
 0x242   : > { %v1631_v30 = vmax.f32 %v3312_v26, 0.0  ;;  %v3692_v26 = vld [vmem:[%s4605_s7] sm:$0xff]  }
 0x243   : > { %v1632_v32 = vmax.f32 %v3313_v28, 0.0  ;;  %v4342_v28 = vld [vmem:[%s4602_s4] ss:$0 sm:$0xff] }
 0x244   : > { %v1657_v33 = vpack.c.bf16 %v1631_v30, %v1629_v29 }
 0x245   : > { %v1658_v34 = vpack.c.bf16 %v1632_v32, %v1630_v31  ;;  %v1576_v35 = vpop.f32.mrb[28].mxu0 }
 0x246   : > { %v3314_v36 = vadd.f32 %v1576_v35, %v4263_v51  ;;  %v1578_v45 = vpop.f32.mrb[29].mxu0 }
 0x247   : > { %v3315_v46 = vadd.f32 %v1578_v45, %v4265_v52  ;;  %v1580_v47 = vpop.f32.mrb[30].mxu0  ;;  %1880 = vmatprep.mubr.bf16.mxu1 %v1658_v34 }
 0x248   : > { %v3316_v48 = vadd.f32 %v1580_v47, %v4263_v51  ;;  %v1582_v49 = vpop.f32.mrb[31].mxu0  ;;  %1881 = vmatmul.mubr.bf16.gmra.mrb[32].mxu1 %v1657_v33  ;;  %v1633_v53 = vmax.f32 %v3314_v36, 0.0  ;;  %v3689_v51 = vld [vmem:[%s4603_s5 + $0x28] sm:$0xff]  }
 0x249   : > { %v3317_v50 = vadd.f32 %v1582_v49, %v4265_v52  ;;  %v1634_v56 = vmax.f32 %v3315_v46, 0.0  ;;  %3176 = vmatprep.subr.bf16.mxu1 %v3689_v51  ;;  %v3690_v52 = vld [vmem:[%s4603_s5 + $0x30] sm:$0xff]  }
 0x24a   : > { %v1635_v54 = vmax.f32 %v3316_v48, 0.0  ;;  %3177 = vmatpush3.bf16.msra.mxu1 %v3689_v51 }
 0x24b   : > { %v1636_v57 = vmax.f32 %v3317_v50, 0.0  ;;  %3178 = vmatprep.subr.bf16.mxu1 %v3690_v52 }
 0x24c   : > { %v1659_v59 = vpack.c.bf16 %v1635_v54, %v1633_v53 }
 0x24d   : > { %v1660_v60 = vpack.c.bf16 %v1636_v57, %v1634_v56  ;;  %v1586_v61 = vpop.f32.mrb[32].mxu0 }
 0x24e   : > { %v3319_v63 = vadd.f32 %v1586_v61, %v1321_v55  ;;  %v1588_v0 = vpop.f32.mrb[33].mxu0  ;;  %3179 = vmatpush3.bf16.msra.mxu1 %v3690_v52 }
 0x24f   : > { %v3321_v2 = vadd.f32 %v1588_v0, %v1323_v58  ;;  %v1590_v3 = vpop.f32.mrb[34].mxu0  ;;  %1888 = vmatprep.mubr.bf16.mxu1 %v1660_v60  ;;  %3180 = vmatprep.subr.bf16.mxu1 %v3691_v25  ;;  %v3693_v0 = vld [vmem:[%s4605_s7 + $0x8] sm:$0xff]  }
 0x250   : > { %v3323_v37 = vadd.f32 %v1590_v3, %v1325_v62  ;;  %v1592_v4 = vpop.f32.mrb[35].mxu0  ;;  %1889 = vmatmul.mubr.bf16.gmra.mrb[36].mxu1 %v1659_v59  ;;  %v1637_v6 = vmax.f32 %v3319_v63, 0.0 }
 0x251   : > { %v3325_v5 = vadd.f32 %v1592_v4, %v1327_v1  ;;  %v1638_v8 = vmax.f32 %v3321_v2, 0.0 }
 0x252   : > { %v1639_v38 = vmax.f32 %v3323_v37, 0.0  ;;  %3181 = vmatpush3.bf16.msra.mxu1 %v3691_v25 }
 0x253   : > { %v1640_v9 = vmax.f32 %v3325_v5, 0.0  ;;  %3202 = vmatprep.subr.bf16.mxu1 %v3692_v26 }
 0x254   : > { %v1661_v10 = vpack.c.bf16 %v1639_v38, %v1637_v6 }
 0x255   : > { %v1662_v11 = vpack.c.bf16 %v1640_v9, %v1638_v8  ;;  %v1596_v40 = vpop.f32.mrb[36].mxu0 }
 0x256   : > { %v3327_v13 = vadd.f32 %v1596_v40, %v1331_v7  ;;  %v1598_v14 = vpop.f32.mrb[37].mxu0 }
 0x257   : > { %v3329_v16 = vadd.f32 %v1598_v14, %v1333_v39  ;;  %v1600_v17 = vpop.f32.mrb[38].mxu0  ;;  %1896 = vmatprep.mubr.bf16.mxu1 %v1662_v11 }
 0x258   : > { %v3331_v41 = vadd.f32 %v1600_v17, %v1335_v12  ;;  %v1602_v18 = vpop.f32.mrb[39].mxu0  ;;  %1897 = vmatmul.mubr.bf16.gmra.mrb[40].mxu1 %v1661_v10  ;;  %v1641_v20 = vmax.f32 %v3327_v13, 0.0 }
 0x259   : > { %v3333_v19 = vadd.f32 %v1602_v18, %v1337_v15  ;;  %v1642_v21 = vmax.f32 %v3329_v16, 0.0 }
 0x25a   : > { %v1643_v42 = vmax.f32 %v3331_v41, 0.0 }
 0x25b   : > { %v1644_v22 = vmax.f32 %v3333_v19, 0.0 }
 0x25c   : > { %v1663_v23 = vpack.c.bf16 %v1643_v42, %v1641_v20 }
 0x25d   : > { %v1664_v24 = vpack.c.bf16 %v1644_v22, %v1642_v21 }
 0x25f   : > { %1904 = vmatprep.mubr.bf16.mxu1 %v1664_v24 }
 0x260   : > { %1905 = vmatmul.mubr.bf16.gmra.mrb[44].mxu1 %v1663_v23 }
 0x2eb   : > { %v3062_v27 = vpop.f32.mrb[8].mxu1 }
 0x2ec   : > { %v3063_v29 = vpop.f32.mrb[9].mxu1 }
 0x2ed   : > { %v3064_v30 = vadd.f32 %v3063_v29, %v3062_v27  ;;  %v3065_v31 = vpop.f32.mrb[10].mxu1 }
 0x2ee   : > { %v3066_v32 = vpop.f32.mrb[11].mxu1 }
 0x2ef   : > { %v1835_v33 = vadd.f32 %v3064_v30, %v4342_v28  ;;  %v3067_v34 = vadd.f32 %v3066_v32, %v3065_v31 }
 0x2f1   : > { %v1838_v35 = vadd.f32 %v3067_v34, %v4342_v28  ;;  %v1913_v36 = vmax.f32 %v1835_v33, 0.0 }
 0x2f3   : > { %v1914_v45 = vmax.f32 %v1838_v35, 0.0  ;;  %v3068_v46 = vpop.f32.mrb[12].mxu1 }
 0x2f4   : > { %v3069_v47 = vpop.f32.mrb[13].mxu1 }
 0x2f5   : > { %v3070_v48 = vadd.f32 %v3069_v47, %v3068_v46  ;;  %v3071_v49 = vpop.f32.mrb[14].mxu1  ;;  %v1933_v50 = vpack.c.bf16 %v1914_v45, %v1913_v36 }
 0x2f6   : > { %v3072_v53 = vpop.f32.mrb[15].mxu1 }
 0x2f7   : > { %v1843_v54 = vadd.f32 %v3070_v48, %v4342_v28  ;;  %v3073_v55 = vadd.f32 %v3072_v53, %v3071_v49  ;;  %3182 = vmatprep.mubr.bf16.mxu1 %v1933_v50 }
 0x2f9   : > { %v1846_v56 = vadd.f32 %v3073_v55, %v4342_v28  ;;  %v1915_v57 = vmax.f32 %v1843_v54, 0.0 }
 0x2fb   : > { %v1916_v58 = vmax.f32 %v1846_v56, 0.0  ;;  %v3074_v59 = vpop.f32.mrb[16].mxu1 }
 0x2fc   : > { %v3075_v60 = vpop.f32.mrb[17].mxu1 }
 0x2fd   : > { %v1934_v61 = vpack.c.bf16 %v1916_v58, %v1915_v57  ;;  %v3076_v62 = vadd.f32 %v3075_v60, %v3074_v59  ;;  %v3077_v63 = vpop.f32.mrb[18].mxu1 }
 0x2fe   : > { %v3078_v1 = vpop.f32.mrb[19].mxu1 }
 0x2ff   : > { %v1851_v2 = vadd.f32 %v3076_v62, %v4342_v28  ;;  %v3079_v3 = vadd.f32 %v3078_v1, %v3077_v63  ;;  %3183 = vmatmul.mubr.bf16.vlgmr.msra.gmra.mrb[48].mxu1 %v1934_v61 }
 0x300   : > { %3203 = vmatpush3.bf16.msra.mxu1 %v3692_v26 }
 0x301   : > { %v1854_v37 = vadd.f32 %v3079_v3, %v4342_v28  ;;  %3204 = vmatprep.subr.bf16.mxu1 %v3693_v0  ;;  %v1917_v4 = vmax.f32 %v1851_v2, 0.0 }
 0x303   : > { %v1918_v5 = vmax.f32 %v1854_v37, 0.0  ;;  %v3080_v6 = vpop.f32.mrb[20].mxu1 }
 0x304   : > { %v3081_v38 = vpop.f32.mrb[21].mxu1  ;;  %3205 = vmatpush3.bf16.msra.mxu1 %v3693_v0 }
 0x305   : > { %v3082_v7 = vadd.f32 %v3081_v38, %v3080_v6  ;;  %v3083_v8 = vpop.f32.mrb[22].mxu1  ;;  %v1935_v9 = vpack.c.bf16 %v1918_v5, %v1917_v4 }
 0x306   : > { %v3084_v39 = vpop.f32.mrb[23].mxu1 }
 0x307   : > { %v1859_v10 = vadd.f32 %v3082_v7, %v4342_v28  ;;  %v3085_v11 = vadd.f32 %v3084_v39, %v3083_v8  ;;  %3186 = vmatprep.mubr.bf16.mxu1 %v1935_v9 }
 0x309   : > { %v1862_v40 = vadd.f32 %v3085_v11, %v4342_v28  ;;  %v1919_v12 = vmax.f32 %v1859_v10, 0.0 }
 0x30b   : > { %v1920_v13 = vmax.f32 %v1862_v40, 0.0  ;;  %v3086_v14 = vpop.f32.mrb[24].mxu1 }
 0x30c   : > { %v3087_v15 = vpop.f32.mrb[25].mxu1 }
 0x30d   : > { %v3088_v16 = vadd.f32 %v3087_v15, %v3086_v14  ;;  %v3089_v17 = vpop.f32.mrb[26].mxu1  ;;  %v1936_v41 = vpack.c.bf16 %v1920_v13, %v1919_v12 }
 0x30e   : > { %v3090_v18 = vpop.f32.mrb[27].mxu1 }
 0x30f   : > { %v1867_v19 = vadd.f32 %v3088_v16, %v4342_v28  ;;  %v3091_v20 = vadd.f32 %v3090_v18, %v3089_v17  ;;  %3187 = vmatmul.mubr.bf16.gmra.mrb[52].mxu1 %v1936_v41  ;;  %v3694_v41 = vld [vmem:[%s4605_s7 + $0x10] sm:$0xff]   ;;  %v3695_v18 = vld [vmem:[%s4605_s7 + $0x18] sm:$0xff]  }
 0x310   : > { %3206 = vmatprep.subr.bf16.mxu1 %v3694_v41 }
 0x311   : > { %v1870_v42 = vadd.f32 %v3091_v20, %v4342_v28  ;;  %v1921_v21 = vmax.f32 %v1867_v19, 0.0  ;;  %3207 = vmatpush3.bf16.msra.mxu1 %v3694_v41 }
 0x312   : > { %3208 = vmatprep.subr.bf16.mxu1 %v3695_v18 }
 0x313   : > { %v1922_v22 = vmax.f32 %v1870_v42, 0.0  ;;  %v3092_v23 = vpop.f32.mrb[28].mxu1 }
 0x314   : > { %v3093_v24 = vpop.f32.mrb[29].mxu1 }
 0x315   : > { %v3094_v43 = vadd.f32 %v3093_v24, %v3092_v23  ;;  %v3095_v44 = vpop.f32.mrb[30].mxu1  ;;  %v1937_v51 = vpack.c.bf16 %v1922_v22, %v1921_v21  ;;  %3209 = vmatpush3.bf16.msra.mxu1 %v3695_v18 }
 0x316   : > { %v3096_v52 = vpop.f32.mrb[31].mxu1 }
 0x317   : > { %v1875_v25 = vadd.f32 %v3094_v43, %v4342_v28  ;;  %v3097_v26 = vadd.f32 %v3096_v52, %v3095_v44  ;;  %3190 = vmatprep.mubr.bf16.mxu1 %v1937_v51 }
 0x319   : > { %v1878_v27 = vadd.f32 %v3097_v26, %v4342_v28  ;;  %v1923_v29 = vmax.f32 %v1875_v25, 0.0 }
 0x31b   : > { %v1924_v30 = vmax.f32 %v1878_v27, 0.0  ;;  %v3098_v31 = vpop.f32.mrb[32].mxu1 }
 0x31c   : > { %v3099_v32 = vpop.f32.mrb[33].mxu1 }
 0x31d   : > { %v3100_v33 = vadd.f32 %v3099_v32, %v3098_v31  ;;  %v3101_v34 = vpop.f32.mrb[34].mxu1  ;;  %v1938_v35 = vpack.c.bf16 %v1924_v30, %v1923_v29 }
 0x31e   : > { %v3102_v36 = vpop.f32.mrb[35].mxu1 }
 0x31f   : > { %v1883_v45 = vadd.f32 %v3100_v33, %v4342_v28  ;;  %v3103_v46 = vadd.f32 %v3102_v36, %v3101_v34  ;;  %3191 = vmatmul.mubr.bf16.gmra.mrb[56].mxu1 %v1938_v35 }
 0x321   : > { %v1886_v47 = vadd.f32 %v3103_v46, %v4342_v28  ;;  %v1925_v48 = vmax.f32 %v1883_v45, 0.0 }
 0x323   : > { %v1926_v49 = vmax.f32 %v1886_v47, 0.0  ;;  %v3104_v50 = vpop.f32.mrb[36].mxu1 }
 0x324   : > { %v3105_v53 = vpop.f32.mrb[37].mxu1 }
 0x325   : > { %v3106_v54 = vadd.f32 %v3105_v53, %v3104_v50  ;;  %v3107_v55 = vpop.f32.mrb[38].mxu1  ;;  %v1939_v56 = vpack.c.bf16 %v1926_v49, %v1925_v48 }
 0x326   : > { %v3108_v57 = vpop.f32.mrb[39].mxu1 }
 0x327   : > { %v1891_v58 = vadd.f32 %v3106_v54, %v4342_v28  ;;  %v3109_v59 = vadd.f32 %v3108_v57, %v3107_v55  ;;  %3194 = vmatprep.mubr.bf16.mxu1 %v1939_v56 }
 0x329   : > { %v1894_v60 = vadd.f32 %v3109_v59, %v4342_v28  ;;  %v1927_v61 = vmax.f32 %v1891_v58, 0.0 }
 0x32b   : > { %v1928_v62 = vmax.f32 %v1894_v60, 0.0  ;;  %v3110_v63 = vpop.f32.mrb[40].mxu1 }
 0x32c   : > { %v3111_v0 = vpop.f32.mrb[41].mxu1 }
 0x32d   : > { %v3112_v1 = vadd.f32 %v3111_v0, %v3110_v63  ;;  %v3113_v2 = vpop.f32.mrb[42].mxu1  ;;  %v1940_v3 = vpack.c.bf16 %v1928_v62, %v1927_v61 }
 0x32e   : > { %v3114_v37 = vpop.f32.mrb[43].mxu1 }
 0x32f   : > { %v1899_v4 = vadd.f32 %v3112_v1, %v4342_v28  ;;  %v3115_v5 = vadd.f32 %v3114_v37, %v3113_v2  ;;  %3195 = vmatmul.mubr.bf16.gmra.mrb[60].mxu1 %v1940_v3 }
 0x331   : > { %v1902_v6 = vadd.f32 %v3115_v5, %v4342_v28  ;;  %v1929_v38 = vmax.f32 %v1899_v4, 0.0 }
 0x333   : > { %v1930_v7 = vmax.f32 %v1902_v6, 0.0  ;;  %v3116_v8 = vpop.f32.mrb[44].mxu1 }
 0x334   : > { %v3117_v9 = vpop.f32.mrb[45].mxu1 }
 0x335   : > { %v3118_v39 = vadd.f32 %v3117_v9, %v3116_v8  ;;  %v3119_v10 = vpop.f32.mrb[46].mxu1  ;;  %v1941_v11 = vpack.c.bf16 %v1930_v7, %v1929_v38 }
 0x336   : > { %v3120_v40 = vpop.f32.mrb[47].mxu1 }
 0x337   : > { %v1907_v12 = vadd.f32 %v3118_v39, %v4342_v28  ;;  %v3121_v13 = vadd.f32 %v3120_v40, %v3119_v10  ;;  %3198 = vmatprep.mubr.bf16.mxu1 %v1941_v11 }
 0x339   : > { %v1910_v14 = vadd.f32 %v3121_v13, %v4342_v28  ;;  %v1931_v15 = vmax.f32 %v1907_v12, 0.0  ;;  %v4376_v28 = vld [vmem:[%s4604_s6] ss:$0 sm:$0xff] }
 0x33b   : > { %v1932_v16 = vmax.f32 %v1910_v14, 0.0 }
 0x33d   : > { %v1942_v17 = vpack.c.bf16 %v1932_v16, %v1931_v15 }
 0x33f   : > { %3199 = vmatmul.mubr.bf16.gmra.mrb[64].mxu1 %v1942_v17 }
 0x3d2   : > { %v3184_v19 = vpop.f32.mrb[48].mxu1 }
 0x3d3   : > { %v2057_v20 = vadd.f32 %v3184_v19, %v4376_v28  ;;  %v2048_v42 = vpop.f32.mrb[49].mxu1 }
 0x3d4   : > { %v2049_v21 = vadd.f32 %v4376_v28, %v2048_v42  ;;  %v3185_v22 = vpop.f32.mrb[50].mxu1 }
 0x3d5   : > { %v2060_v23 = vadd.f32 %v3185_v22, %v4376_v28  ;;  %v2051_v24 = vpop.f32.mrb[51].mxu1  ;;  %v2129_v44 = vmax.f32 %v2057_v20, 0.0 }
 0x3d6   : > { %v2052_v43 = vadd.f32 %v4376_v28, %v2051_v24  ;;  %v2127_v52 = vmax.f32 %v2049_v21, 0.0 }
 0x3d7   : > { %v2130_v51 = vmax.f32 %v2060_v23, 0.0 }
 0x3d8   : > { %v2128_v25 = vmax.f32 %v2052_v43, 0.0  ;;  %v3696_v43 = vld [vmem:[%s4607_s9] sm:$0xff]  }
 0x3d9   : > { %v2148_v26 = vpack.c.bf16 %v2130_v51, %v2129_v44  ;;  %3230 = vmatprep.subr.bf16.mxu1 %v3696_v43  ;;  %v4417_v44 = vld [vmem:[%s4606_s8] ss:$0 sm:$0xff] }
 0x3da   : > { %v2147_v27 = vpack.c.bf16 %v2128_v25, %v2127_v52 }
 0x3dc   : > { %3210 = vmatprep.mubr.msk.bf16.mxu1 %vm2196_vm0, %v2147_v27 }
 0x3dd   : > { %3211 = vmatmul.mubr.msk.bf16.vlgmr.msra.gmra.mrb[68].mxu1 %vm2196_vm0, %v2148_v26 }
 0x3de   : > { %3231 = vmatpush3.bf16.msra.mxu1 %v3696_v43 }
 0x3e2   : > { %v3188_v29 = vpop.f32.mrb[52].mxu1 }
 0x3e3   : > { %v2073_v30 = vadd.f32 %v3188_v29, %v4376_v28  ;;  %v2064_v31 = vpop.f32.mrb[53].mxu1 }
 0x3e4   : > { %v2065_v32 = vadd.f32 %v4376_v28, %v2064_v31  ;;  %v3189_v33 = vpop.f32.mrb[54].mxu1 }
 0x3e5   : > { %v2076_v34 = vadd.f32 %v3189_v33, %v4376_v28  ;;  %v2067_v35 = vpop.f32.mrb[55].mxu1  ;;  %v2133_v45 = vmax.f32 %v2073_v30, 0.0 }
 0x3e6   : > { %v2068_v36 = vadd.f32 %v4376_v28, %v2067_v35  ;;  %v2131_v47 = vmax.f32 %v2065_v32, 0.0 }
 0x3e7   : > { %v2134_v46 = vmax.f32 %v2076_v34, 0.0 }
 0x3e8   : > { %v2132_v48 = vmax.f32 %v2068_v36, 0.0 }
 0x3e9   : > { %v2150_v49 = vpack.c.bf16 %v2134_v46, %v2133_v45 }
 0x3ea   : > { %v2149_v50 = vpack.c.bf16 %v2132_v48, %v2131_v47 }
 0x3ec   : > { %3214 = vmatprep.mubr.msk.bf16.mxu1 %vm2196_vm0, %v2149_v50 }
 0x3ed   : > { %3215 = vmatmul.mubr.msk.bf16.gmra.mrb[72].mxu1 %vm2196_vm0, %v2150_v49 }
 0x3f2   : > { %v3192_v53 = vpop.f32.mrb[56].mxu1 }
 0x3f3   : > { %v2089_v54 = vadd.f32 %v3192_v53, %v4376_v28  ;;  %v2080_v55 = vpop.f32.mrb[57].mxu1 }
 0x3f4   : > { %v2081_v56 = vadd.f32 %v4376_v28, %v2080_v55  ;;  %v3193_v57 = vpop.f32.mrb[58].mxu1 }
 0x3f5   : > { %v2092_v58 = vadd.f32 %v3193_v57, %v4376_v28  ;;  %v2083_v59 = vpop.f32.mrb[59].mxu1  ;;  %v2137_v61 = vmax.f32 %v2089_v54, 0.0 }
 0x3f6   : > { %v2084_v60 = vadd.f32 %v4376_v28, %v2083_v59  ;;  %v2135_v63 = vmax.f32 %v2081_v56, 0.0 }
 0x3f7   : > { %v2138_v62 = vmax.f32 %v2092_v58, 0.0 }
 0x3f8   : > { %v2136_v0 = vmax.f32 %v2084_v60, 0.0 }
 0x3f9   : > { %v2152_v1 = vpack.c.bf16 %v2138_v62, %v2137_v61 }
 0x3fa   : > { %v2151_v2 = vpack.c.bf16 %v2136_v0, %v2135_v63 }
 0x3fc   : > { %3218 = vmatprep.mubr.msk.bf16.mxu1 %vm2196_vm0, %v2151_v2 }
 0x3fd   : > { %3219 = vmatmul.mubr.msk.bf16.gmra.mrb[76].mxu1 %vm2196_vm0, %v2152_v1 }
 0x402   : > { %v3196_v3 = vpop.f32.mrb[60].mxu1 }
 0x403   : > { %v2105_v37 = vadd.f32 %v3196_v3, %v4376_v28  ;;  %v2096_v4 = vpop.f32.mrb[61].mxu1 }
 0x404   : > { %v2097_v5 = vadd.f32 %v4376_v28, %v2096_v4  ;;  %v3197_v6 = vpop.f32.mrb[62].mxu1 }
 0x405   : > { %v2108_v38 = vadd.f32 %v3197_v6, %v4376_v28  ;;  %v2099_v7 = vpop.f32.mrb[63].mxu1  ;;  %v2141_v9 = vmax.f32 %v2105_v37, 0.0 }
 0x406   : > { %v2100_v8 = vadd.f32 %v4376_v28, %v2099_v7  ;;  %v2139_v10 = vmax.f32 %v2097_v5, 0.0 }
 0x407   : > { %v2142_v39 = vmax.f32 %v2108_v38, 0.0 }
 0x408   : > { %v2140_v11 = vmax.f32 %v2100_v8, 0.0 }
 0x409   : > { %v2154_v40 = vpack.c.bf16 %v2142_v39, %v2141_v9 }
 0x40a   : > { %v2153_v12 = vpack.c.bf16 %v2140_v11, %v2139_v10 }
 0x40c   : > { %3222 = vmatprep.mubr.msk.bf16.mxu1 %vm2196_vm0, %v2153_v12 }
 0x40d   : > { %3223 = vmatmul.mubr.msk.bf16.gmra.mrb[80].mxu1 %vm2196_vm0, %v2154_v40 }
 0x412   : > { %v3200_v13 = vpop.f32.mrb[64].mxu1 }
 0x413   : > { %v2121_v14 = vadd.f32 %v3200_v13, %v4376_v28  ;;  %v2112_v15 = vpop.f32.mrb[65].mxu1 }
 0x414   : > { %v2113_v16 = vadd.f32 %v4376_v28, %v2112_v15  ;;  %v3201_v17 = vpop.f32.mrb[66].mxu1 }
 0x415   : > { %v2124_v41 = vadd.f32 %v3201_v17, %v4376_v28  ;;  %v2115_v18 = vpop.f32.mrb[67].mxu1  ;;  %v2145_v20 = vmax.f32 %v2121_v14, 0.0 }
 0x416   : > { %v2116_v19 = vadd.f32 %v4376_v28, %v2115_v18  ;;  %v2143_v21 = vmax.f32 %v2113_v16, 0.0  ;;  %v3697_v28 = vld [vmem:[%s4607_s9 + $0x8] sm:$0xff]  }
 0x417   : > { %v2146_v42 = vmax.f32 %v2124_v41, 0.0  ;;  %3232 = vmatprep.subr.bf16.mxu1 %v3697_v28 }
 0x418   : > { %v2144_v22 = vmax.f32 %v2116_v19, 0.0  ;;  %3233 = vmatpush3.bf16.msra.mxu1 %v3697_v28 }
 0x419   : > { %v2156_v23 = vpack.c.bf16 %v2146_v42, %v2145_v20 }
 0x41a   : > { %v2155_v24 = vpack.c.bf16 %v2144_v22, %v2143_v21 }
 0x41c   : > { %3226 = vmatprep.mubr.msk.bf16.mxu1 %vm2196_vm0, %v2155_v24 }
 0x41d   : > { %3227 = vmatmul.mubr.msk.bf16.gmra.mrb[84].mxu1 %vm2196_vm0, %v2156_v23 }
 0x4b0   : > { %v3212_v51 = vpop.f32.mrb[68].mxu1 }
 0x4b1   : > { %v2270_v52 = vadd.f32 %v3212_v51, %v4417_v44  ;;  %v2261_v25 = vpop.f32.mrb[69].mxu1 }
 0x4b2   : > { %v2262_v26 = vadd.f32 %v4417_v44, %v2261_v25  ;;  %v3213_v27 = vpop.f32.mrb[70].mxu1 }
 0x4b3   : > { %v2273_v29 = vadd.f32 %v3213_v27, %v4417_v44  ;;  %v2264_v30 = vpop.f32.mrb[71].mxu1  ;;  %v2342_v32 = vmax.f32 %v2270_v52, 0.0 }
 0x4b4   : > { %v2265_v31 = vadd.f32 %v4417_v44, %v2264_v30  ;;  %v2340_v34 = vmax.f32 %v2262_v26, 0.0 }
 0x4b5   : > { %v2343_v33 = vmax.f32 %v2273_v29, 0.0 }
 0x4b6   : > { %v2341_v35 = vmax.f32 %v2265_v31, 0.0  ;;  %v3020_v31 = vld [vmem:[#allocation2] ss:$0 sm:$0xff] }
 0x4b7   : > { %v2361_v36 = vpack.c.bf16 %v2343_v33, %v2342_v32 }
 0x4b8   : > { %v2360_v45 = vpack.c.bf16 %v2341_v35, %v2340_v34 }
 0x4ba   : > { %3234 = vmatprep.mubr.msk.bf16.mxu1 %vm2393_vm1, %v2360_v45 }
 0x4bb   : > { %3235 = vmatmul.mubr.msk.bf16.vlgmr.msra.gmra.mrb[88].mxu1 %vm2393_vm1, %v2361_v36 }
 0x4c0   : > { %v3216_v46 = vpop.f32.mrb[72].mxu1 }
 0x4c1   : > { %v2286_v47 = vadd.f32 %v3216_v46, %v4417_v44  ;;  %v2277_v48 = vpop.f32.mrb[73].mxu1 }
 0x4c2   : > { %v2278_v49 = vadd.f32 %v4417_v44, %v2277_v48  ;;  %v3217_v50 = vpop.f32.mrb[74].mxu1 }
 0x4c3   : > { %v2289_v53 = vadd.f32 %v3217_v50, %v4417_v44  ;;  %v2280_v54 = vpop.f32.mrb[75].mxu1  ;;  %v2346_v56 = vmax.f32 %v2286_v47, 0.0 }
 0x4c4   : > { %v2281_v55 = vadd.f32 %v4417_v44, %v2280_v54  ;;  %v2344_v58 = vmax.f32 %v2278_v49, 0.0 }
 0x4c5   : > { %v2347_v57 = vmax.f32 %v2289_v53, 0.0 }
 0x4c6   : > { %v2345_v59 = vmax.f32 %v2281_v55, 0.0 }
 0x4c7   : > { %v2363_v60 = vpack.c.bf16 %v2347_v57, %v2346_v56 }
 0x4c8   : > { %v2362_v61 = vpack.c.bf16 %v2345_v59, %v2344_v58 }
 0x4ca   : > { %3238 = vmatprep.mubr.msk.bf16.mxu1 %vm2393_vm1, %v2362_v61 }
 0x4cb   : > { %3239 = vmatmul.mubr.msk.bf16.gmra.mrb[92].mxu1 %vm2393_vm1, %v2363_v60 }
 0x4d0   : > { %v3220_v62 = vpop.f32.mrb[76].mxu1 }
 0x4d1   : > { %v2302_v63 = vadd.f32 %v3220_v62, %v4417_v44  ;;  %v2293_v0 = vpop.f32.mrb[77].mxu1 }
 0x4d2   : > { %v2294_v1 = vadd.f32 %v4417_v44, %v2293_v0  ;;  %v3221_v2 = vpop.f32.mrb[78].mxu1 }
 0x4d3   : > { %v2305_v3 = vadd.f32 %v3221_v2, %v4417_v44  ;;  %v2296_v37 = vpop.f32.mrb[79].mxu1  ;;  %v2350_v5 = vmax.f32 %v2302_v63, 0.0 }
 0x4d4   : > { %v2297_v4 = vadd.f32 %v4417_v44, %v2296_v37  ;;  %v2348_v38 = vmax.f32 %v2294_v1, 0.0 }
 0x4d5   : > { %v2351_v6 = vmax.f32 %v2305_v3, 0.0 }
 0x4d6   : > { %v2349_v7 = vmax.f32 %v2297_v4, 0.0 }
 0x4d7   : > { %v2365_v8 = vpack.c.bf16 %v2351_v6, %v2350_v5 }
 0x4d8   : > { %v2364_v9 = vpack.c.bf16 %v2349_v7, %v2348_v38 }
 0x4da   : > { %3242 = vmatprep.mubr.msk.bf16.mxu1 %vm2393_vm1, %v2364_v9 }
 0x4db   : > { %3243 = vmatmul.mubr.msk.bf16.gmra.mrb[96].mxu1 %vm2393_vm1, %v2365_v8 }
 0x4e0   : > { %v3224_v39 = vpop.f32.mrb[80].mxu1 }
 0x4e1   : > { %v2318_v10 = vadd.f32 %v3224_v39, %v4417_v44  ;;  %v2309_v11 = vpop.f32.mrb[81].mxu1 }
 0x4e2   : > { %v2310_v40 = vadd.f32 %v4417_v44, %v2309_v11  ;;  %v3225_v12 = vpop.f32.mrb[82].mxu1 }
 0x4e3   : > { %v2321_v13 = vadd.f32 %v3225_v12, %v4417_v44  ;;  %v2312_v14 = vpop.f32.mrb[83].mxu1  ;;  %v2354_v16 = vmax.f32 %v2318_v10, 0.0 }
 0x4e4   : > { %v2313_v15 = vadd.f32 %v4417_v44, %v2312_v14  ;;  %v2352_v41 = vmax.f32 %v2310_v40, 0.0 }
 0x4e5   : > { %v2355_v17 = vmax.f32 %v2321_v13, 0.0 }
 0x4e6   : > { %v2353_v18 = vmax.f32 %v2313_v15, 0.0 }
 0x4e7   : > { %v2367_v19 = vpack.c.bf16 %v2355_v17, %v2354_v16 }
 0x4e8   : > { %v2366_v20 = vpack.c.bf16 %v2353_v18, %v2352_v41 }
 0x4ea   : > { %3246 = vmatprep.mubr.msk.bf16.mxu1 %vm2393_vm1, %v2366_v20 }
 0x4eb   : > { %3247 = vmatmul.mubr.msk.bf16.gmra.mrb[100].mxu1 %vm2393_vm1, %v2367_v19 }
 0x4f0   : > { %v3228_v42 = vpop.f32.mrb[84].mxu1 }
 0x4f1   : > { %v2334_v21 = vadd.f32 %v3228_v42, %v4417_v44  ;;  %v2325_v22 = vpop.f32.mrb[85].mxu1 }
 0x4f2   : > { %v2326_v23 = vadd.f32 %v4417_v44, %v2325_v22  ;;  %v3229_v24 = vpop.f32.mrb[86].mxu1 }
 0x4f3   : > { %v2337_v43 = vadd.f32 %v3229_v24, %v4417_v44  ;;  %v2328_v28 = vpop.f32.mrb[87].mxu1  ;;  %v2358_v52 = vmax.f32 %v2334_v21, 0.0 }
 0x4f4   : > { %v2329_v51 = vadd.f32 %v4417_v44, %v2328_v28  ;;  %v2356_v26 = vmax.f32 %v2326_v23, 0.0 }
 0x4f5   : > { %v2359_v25 = vmax.f32 %v2337_v43, 0.0 }
 0x4f6   : > { %v2357_v27 = vmax.f32 %v2329_v51, 0.0 }
 0x4f7   : > { %v2369_v29 = vpack.c.bf16 %v2359_v25, %v2358_v52 }
 0x4f8   : > { %v2368_v30 = vpack.c.bf16 %v2357_v27, %v2356_v26 }
 0x4fa   : > { %3250 = vmatprep.mubr.msk.bf16.mxu1 %vm2393_vm1, %v2368_v30 }
 0x4fb   : > { %3251 = vmatmul.mubr.msk.bf16.gmra.mrb[104].mxu1 %vm2393_vm1, %v2369_v29 }
 0x58e   : > { %v3236_v32 = vpop.f32.mrb[88].mxu1 }
 0x58f   : > { %v2467_v33 = vadd.f32 %v3236_v32, %v3020_v31  ;;  %v2458_v34 = vpop.f32.mrb[89].mxu1 }
 0x590   : > { %v2459_v35 = vadd.f32 %v3020_v31, %v2458_v34  ;;  %v3237_v36 = vpop.f32.mrb[90].mxu1 }
 0x591   : > { %2540 = vst.msk [vmem:[%s4450_s28 + $0x10] sm:$0xff] %vm2537_vm2, %v2467_v33  ;;  %v2470_v44 = vadd.f32 %v3237_v36, %v3020_v31  ;;  %v2461_v45 = vpop.f32.mrb[91].mxu1 }
 0x592   : > { %2538 = vst.msk [vmem:[%s4450_s28] sm:$0xff] %vm2537_vm2, %v2459_v35  ;;  %v2462_v46 = vadd.f32 %v3020_v31, %v2461_v45 }
 0x593   : > { %2541 = vst.msk [vmem:[%s4450_s28 + $0x18] sm:$0xff] %vm2537_vm2, %v2470_v44 }
 0x594   : > { %2539 = vst.msk [vmem:[%s4450_s28 + $0x8] sm:$0xff] %vm2537_vm2, %v2462_v46 }
 0x59e   : > { %v3240_v47 = vpop.f32.mrb[92].mxu1 }
 0x59f   : > { %v2483_v48 = vadd.f32 %v3240_v47, %v3020_v31  ;;  %v2474_v49 = vpop.f32.mrb[93].mxu1 }
 0x5a0   : > { %v2475_v50 = vadd.f32 %v3020_v31, %v2474_v49  ;;  %v3241_v53 = vpop.f32.mrb[94].mxu1 }
 0x5a1   : > { %2544 = vst.msk [vmem:[%s4450_s28 + $0x30] sm:$0xff] %vm2537_vm2, %v2483_v48  ;;  %v2486_v54 = vadd.f32 %v3241_v53, %v3020_v31  ;;  %v2477_v55 = vpop.f32.mrb[95].mxu1 }
 0x5a2   : > { %2542 = vst.msk [vmem:[%s4450_s28 + $0x20] sm:$0xff] %vm2537_vm2, %v2475_v50  ;;  %v2478_v56 = vadd.f32 %v3020_v31, %v2477_v55 }
 0x5a3   : > { %2545 = vst.msk [vmem:[%s4450_s28 + $0x38] sm:$0xff] %vm2537_vm2, %v2486_v54 }
 0x5a4   : > { %2543 = vst.msk [vmem:[%s4450_s28 + $0x28] sm:$0xff] %vm2537_vm2, %v2478_v56 }
 0x5ae   : > { %v3244_v57 = vpop.f32.mrb[96].mxu1 }
 0x5af   : > { %v2499_v58 = vadd.f32 %v3244_v57, %v3020_v31  ;;  %v2490_v59 = vpop.f32.mrb[97].mxu1 }
 0x5b0   : > { %v2491_v60 = vadd.f32 %v3020_v31, %v2490_v59  ;;  %v3245_v61 = vpop.f32.mrb[98].mxu1 }
 0x5b1   : > { %2548 = vst.msk [vmem:[%s4450_s28 + $0x50] sm:$0xff] %vm2537_vm2, %v2499_v58  ;;  %v2502_v62 = vadd.f32 %v3245_v61, %v3020_v31  ;;  %v2493_v63 = vpop.f32.mrb[99].mxu1 }
 0x5b2   : > { %2546 = vst.msk [vmem:[%s4450_s28 + $0x40] sm:$0xff] %vm2537_vm2, %v2491_v60  ;;  %v2494_v0 = vadd.f32 %v3020_v31, %v2493_v63 }
 0x5b3   : > { %2549 = vst.msk [vmem:[%s4450_s28 + $0x58] sm:$0xff] %vm2537_vm2, %v2502_v62 }
 0x5b4   : > { %2547 = vst.msk [vmem:[%s4450_s28 + $0x48] sm:$0xff] %vm2537_vm2, %v2494_v0 }
 0x5be   : > { %v3248_v1 = vpop.f32.mrb[100].mxu1 }
 0x5bf   : > { %v2515_v2 = vadd.f32 %v3248_v1, %v3020_v31  ;;  %v2506_v3 = vpop.f32.mrb[101].mxu1 }
 0x5c0   : > { %v2507_v37 = vadd.f32 %v3020_v31, %v2506_v3  ;;  %v3249_v4 = vpop.f32.mrb[102].mxu1 }
 0x5c1   : > { %2552 = vst.msk [vmem:[%s4450_s28 + $0x70] sm:$0xff] %vm2537_vm2, %v2515_v2  ;;  %v2518_v5 = vadd.f32 %v3249_v4, %v3020_v31  ;;  %v2509_v6 = vpop.f32.mrb[103].mxu1 }
 0x5c2   : > { %2550 = vst.msk [vmem:[%s4450_s28 + $0x60] sm:$0xff] %vm2537_vm2, %v2507_v37  ;;  %v2510_v38 = vadd.f32 %v3020_v31, %v2509_v6 }
 0x5c3   : > { %2553 = vst.msk [vmem:[%s4450_s28 + $0x78] sm:$0xff] %vm2537_vm2, %v2518_v5 }
 0x5c4   : > { %2551 = vst.msk [vmem:[%s4450_s28 + $0x68] sm:$0xff] %vm2537_vm2, %v2510_v38 }
 0x5ce   : > { %v3252_v7 = vpop.f32.mrb[104].mxu1  ;;  %2564 = sbr.rel (!%p4624_p6) target bundleno = 1556 (0x614), region = 76 }
 0x5cf   : > { %v2531_v8 = vadd.f32 %v3252_v7, %v3020_v31  ;;  %v2522_v9 = vpop.f32.mrb[105].mxu1 }
 0x5d0   : > { %v2523_v39 = vadd.f32 %v3020_v31, %v2522_v9  ;;  %v3253_v10 = vpop.f32.mrb[106].mxu1 }
 0x5d1   : > { %2556 = vst.msk [vmem:[%s4450_s28 + $0x90] sm:$0xff] %vm2537_vm2, %v2531_v8  ;;  %v2534_v11 = vadd.f32 %v3253_v10, %v3020_v31  ;;  %v2525_v40 = vpop.f32.mrb[107].mxu1 }
 0x5d2   : > { %2554 = vst.msk [vmem:[%s4450_s28 + $0x80] sm:$0xff] %vm2537_vm2, %v2523_v39  ;;  %v2526_v12 = vadd.f32 %v3020_v31, %v2525_v40 }
 0x5d3   : > { %2557 = vst.msk [vmem:[%s4450_s28 + $0x98] sm:$0xff] %vm2537_vm2, %v2534_v11 }
 0x5d4   : > { %2555 = vst.msk [vmem:[%s4450_s28 + $0x88] sm:$0xff] %vm2537_vm2, %v2526_v12 }
 0x5d5   : > { %s4636_s18 = smov (!%p2567_p7, %s2566_s18), 20 }
 0x5d6   : > { %s3033_s16 = sshll.u32 %s4636_s18, 7 }
 0x5d7   : > { %p3036_p9 = scmp.eq.s32.totalorder %s3033_s16, 0 }
 0x5d8   : > { %3698 = sdivrem.u32 (!%p3036_p9), %s4636_s18, 20 }
 0x5d9   : > { %2575 = sbr.rel (%p3036_p9) target bundleno = 1556 (0x614), region = 80 }
 0x5e1   : > { %s4505_s29 = spop.drf %3698 }
 0x5e2   : > { %p3037_p12 = scmp.le.s32.totalorder %s4505_s29, 0 }
 0x5e3   : > { %s4625_s10 = smov (!%p3037_p12), %s4499_s24  ;;  %s4626_s19 = smov (!%p3037_p12), %s4450_s28 }
 0x5e4   : > { %2816 = sbr.rel (%p3037_p12) target bundleno = 1527 (0x5f7), region = 162  ;;  %s4514_s25 = smov (!%p3037_p12), 0  }
 0x5e5   : > { %s4516_s17 = smov (!%p3037_p12), 0  }
 0x5eb LB: >> { %v2677_v13 = vld [vmem:[%s3836_s19] sm:$0xff]  ;;  %v2679_v14 = vld [vmem:[%s3836_s19 + $0x8] sm:$0xff]  ;;  %v2681_v15 = vld [vmem:[%s3836_s19 + $0x10] sm:$0xff]  ;;  %s2717_s12 = sadd.s32 1, %s3840_s25  ;;  %s2671_s17 = sadd.s32 1, %s3844_s17   ;;  %s3844_s17 = sphi %s4516_s17, %s2671_s17   ;;  %s3840_s25 = sphi %s4514_s25, %s4627_s25   ;;  %s3836_s19 = sphi %s4626_s19, %s2722_s19   ;;  %s3832_s10 = sphi %s4625_s10, %s2723_s10  }
 0x5ec   : >> { %2678 = vst [vmem:[%s3832_s10] sm:$0xff] %v2677_v13  ;;  %2680 = vst [vmem:[%s3832_s10 + $0x8] sm:$0xff] %v2679_v14  ;;  %v2683_v16 = vld [vmem:[%s3836_s19 + $0x18] sm:$0xff]  ;;  %v2685_v17 = vld [vmem:[%s3836_s19 + $0x20] sm:$0xff]  ;;  %p2718_p0 = scmp.ge.s32.totalorder %s2717_s12, %s4505_s29  ;;  %p2670_p2 = scmp.ge.s32.totalorder %s2671_s17, %s4505_s29 }
 0x5ed   : >> { %2682 = vst [vmem:[%s3832_s10 + $0x10] sm:$0xff] %v2681_v15  ;;  %v2687_v41 = vld [vmem:[%s3836_s19 + $0x28] sm:$0xff]  ;;  %2684 = vst [vmem:[%s3832_s10 + $0x18] sm:$0xff] %v2683_v16  ;;  %v2689_v18 = vld [vmem:[%s3836_s19 + $0x30] sm:$0xff] }
 0x5ee   : >> { %2686 = vst [vmem:[%s3832_s10 + $0x20] sm:$0xff] %v2685_v17  ;;  %2688 = vst [vmem:[%s3832_s10 + $0x28] sm:$0xff] %v2687_v41  ;;  %v2691_v19 = vld [vmem:[%s3836_s19 + $0x38] sm:$0xff]  ;;  %v2693_v20 = vld [vmem:[%s3836_s19 + $0x40] sm:$0xff]  ;;  %s4638_s12 = smov (%p2718_p0, %s2717_s12), 0 }
 0x5ef   : >> { %2690 = vst [vmem:[%s3832_s10 + $0x30] sm:$0xff] %v2689_v18  ;;  %2692 = vst [vmem:[%s3832_s10 + $0x38] sm:$0xff] %v2691_v19  ;;  %v2695_v42 = vld [vmem:[%s3836_s19 + $0x48] sm:$0xff]  ;;  %v2697_v21 = vld [vmem:[%s3836_s19 + $0x50] sm:$0xff]  ;;  %s2720_s14 = smul.u32 160, %s4638_s12  ;;  %s4627_s25 = smov %s4638_s12 }
 0x5f0   : >> { %2694 = vst [vmem:[%s3832_s10 + $0x40] sm:$0xff] %v2693_v20  ;;  %v2699_v22 = vld [vmem:[%s3836_s19 + $0x58] sm:$0xff]  ;;  %2696 = vst [vmem:[%s3832_s10 + $0x48] sm:$0xff] %v2695_v42  ;;  %v2701_v23 = vld [vmem:[%s3836_s19 + $0x60] sm:$0xff]  ;;  %2673 = sbr.rel (!%p2670_p2) target bundleno = 1515 (0x5eb), region = 168 }
 0x5f1   : >> { %2698 = vst [vmem:[%s3832_s10 + $0x50] sm:$0xff] %v2697_v21  ;;  %2700 = vst [vmem:[%s3832_s10 + $0x58] sm:$0xff] %v2699_v22  ;;  %v2703_v24 = vld [vmem:[%s3836_s19 + $0x68] sm:$0xff]  ;;  %v2705_v43 = vld [vmem:[%s3836_s19 + $0x70] sm:$0xff] }
 0x5f2   : >> { %2702 = vst [vmem:[%s3832_s10 + $0x60] sm:$0xff] %v2701_v23  ;;  %2704 = vst [vmem:[%s3832_s10 + $0x68] sm:$0xff] %v2703_v24  ;;  %v2707_v28 = vld [vmem:[%s3836_s19 + $0x78] sm:$0xff]  ;;  %v2709_v51 = vld [vmem:[%s3836_s19 + $0x80] sm:$0xff] }
 0x5f3   : >> { %2706 = vst [vmem:[%s3832_s10 + $0x70] sm:$0xff] %v2705_v43  ;;  %v2711_v52 = vld [vmem:[%s3836_s19 + $0x88] sm:$0xff]  ;;  %2708 = vst [vmem:[%s3832_s10 + $0x78] sm:$0xff] %v2707_v28  ;;  %v2713_v25 = vld [vmem:[%s3836_s19 + $0x90] sm:$0xff] }
 0x5f4   : >> { %2710 = vst [vmem:[%s3832_s10 + $0x80] sm:$0xff] %v2709_v51  ;;  %2712 = vst [vmem:[%s3832_s10 + $0x88] sm:$0xff] %v2711_v52  ;;  %v2715_v26 = vld [vmem:[%s3836_s19 + $0x98] sm:$0xff]  ;;  %s2722_s19 = scalar_lea.vmem %s4450_s28, %s2720_s14 [#allocation7]  }
 0x5f5   : >> { %2714 = vst [vmem:[%s3832_s10 + $0x90] sm:$0xff] %v2713_v25  ;;  %2716 = vst [vmem:[%s3832_s10 + $0x98] sm:$0xff] %v2715_v26  ;;  %s2723_s10 = scalar_lea.vmem %s4499_s24, %s2720_s14  }
 0x5f7 PF: > { %3700 = sdivrem.u32 %s4636_s18, 20 }
 0x5f8   : > { %s3038_s13 = smul.u32 160, %s4505_s29 }
 0x5fa   : > { %s2728_s26 = scalar_lea.vmem %s4450_s28, %s3038_s13 [#allocation7]   ;;  %s2730_s22 = scalar_lea.vmem %s4499_s24, %s3038_s13  }
 0x600   : > { %s3701_s30 = spop.drf %3700 }
 0x601   : > { %p3040_p4 = scmp.le.s32.totalorder %s3701_s30, 0 }
 0x602   : > { %s3846_s27 = smov (!%p3040_p4), %s2730_s22   ;;  %s3850_s15 = smov (!%p3040_p4), %s2728_s26  }
 0x603   : > { %2830 = sbr.rel (%p3040_p4) target bundleno = 1556 (0x614), region = 173  ;;  %s3854_s16 = smov (!%p3040_p4), 0  }
 0x604   : > { %s3858_s14 = smov (!%p3040_p4), 0  }
 0x60a LB: >> { %v2740_v27 = vld [vmem:[%s3852_s15] sm:$0xff]  ;;  %s2742_s10 = sadd.s32 1, %s3856_s16  ;;  %s2734_s14 = sadd.s32 1, %s3860_s14   ;;  %s3860_s14 = sphi %s3858_s14, %s2734_s14   ;;  %s3856_s16 = sphi %s3854_s16, %s3855_s16   ;;  %s3852_s15 = sphi %s3850_s15, %s2747_s15   ;;  %s3848_s27 = sphi %s3846_s27, %s2748_s27  }
 0x60b   : >> { %2741 = vst [vmem:[%s3848_s27] sm:$0xff] %v2740_v27  ;;  %p2743_p8 = scmp.ge.s32.totalorder %s2742_s10, %s3701_s30  ;;  %p2733_p10 = scmp.ge.s32.totalorder %s2734_s14, %s3701_s30 }
 0x60d   : >> { %s4640_s10 = smov (%p2743_p8, %s2742_s10), 0  ;;  %2736 = sbr.rel (!%p2733_p10) target bundleno = 1546 (0x60a), region = 179 }
 0x60e   : >> { %s3041_s28 = sshll.u32 %s4640_s10, 3  ;;  %s3855_s16 = smov %s4640_s10  }
 0x60f   : >> { %s2747_s15 = scalar_lea.vmem %s2728_s26, %s3041_s28 [#allocation7]   ;;  %s2748_s27 = scalar_lea.vmem %s2730_s22, %s3041_s28  }
 0x614 PF: > { %s4628_s18 = sld [smem:[#allocation10_spill]]  ;;  %p24_p13 = scmp.ge.s32.totalorder %s3953_s23, 4  }
 0x615   : > { %s4629_s19 = smov %s3820_s20  ;;  %s4630_s20 = smov %s3824_s21 }
 0x616   : > { %s4632_s22 = smov %s3953_s23  ;;  %26 = sbr.rel (!%p24_p13) target bundleno = 7 (0x7), region = 190 }
 0x61a   : > { %s4631_s21 = smov %s4628_s18 }
 0x61d   :  { %2764 = vsyncpa [#allocation4], 1 }
 0x61e   :  { %2766 = vsyncpa [#allocation4 + $0x1], 1 }
 0x61f   :  { %2767 = vsyncpa [#allocation6], 1 }

</bundles_post_ra>
